<compile_context>
chip_gen: v5e
topology: v5e:2x2
jax: 0.10.0
libtpu: 0.0.40
codegen_flags: <defaults>
</compile_context>

<pallas_src>
import functools

import numpy as np
import jax
import jax.numpy as jnp
from jax.experimental import pallas as pl
from jax.experimental.pallas import tpu as pltpu

_F32 = jnp.float32
_BF16 = jnp.bfloat16


# ------------------------------------------------------------------
# host-side constant builders
# ------------------------------------------------------------------
def bilinear_matrix(n_out, n_in):
    """PyTorch F.interpolate(mode='bilinear', align_corners=False) 1-D weights."""
    M = np.zeros((n_out, n_in), dtype=np.float32)
    scale = n_in / n_out
    for i in range(n_out):
        src = (i + 0.5) * scale - 0.5
        if src < 0.0:
            src = 0.0
        i0 = min(int(np.floor(src)), n_in - 1)
        i1 = min(i0 + 1, n_in - 1)
        w1 = src - i0
        M[i, i0] += 1.0 - w1
        M[i, i1] += w1
    return M


def _fold_conv_weight(w, lo, hi, W):
    """w: (Co, Cin_total, 3, 3) Conv2d weight; input-channel slice [lo:hi).

    Returns (3, W*(hi-lo), W*Co) bf16: for each vertical tap ky the three
    horizontal taps are folded into one block-banded matrix
        sum_kx kron(shifted_eye(W, 1-kx), tap[ky, kx])
    acting on a channels-flattened (H, W*Cin) tile.  The shifted identities
    implement the horizontal zero padding, so the kernel needs no width-padded
    input and only 3 lane-dense matmuls per conv."""
    Co = w.shape[0]
    Cs = hi - lo
    taps = jnp.transpose(w[:, lo:hi], (2, 3, 1, 0))              # (3, 3, Cs, Co)
    mats = []
    for ky in range(3):
        m = jnp.zeros((W * Cs, W * Co), _F32)
        for kx in range(3):
            S = jnp.eye(W, k=1 - kx, dtype=_F32)                 # w_in = w_out + kx - 1
            m = m + jnp.einsum("ab,kc->akbc", S, taps[ky, kx]).reshape(W * Cs, W * Co)
        mats.append(m)
    return jnp.stack(mats, 0).astype(_BF16)


def _row_shift_mats(H):
    """(2, H, H) bf16 0/1 matrices: [0] shifts rows down (out row h reads row h-1,
    row 0 -> 0), [1] shifts rows up (row h reads h+1, last row -> 0).  Realises
    the vertical zero padding of the 3x3 conv; exact in bf16."""
    return jnp.asarray(np.stack([np.eye(H, k=-1), np.eye(H, k=1)], 0), _BF16)


def _compiler_params():
    return pltpu.CompilerParams(dimension_semantics=("parallel",),
                                vmem_limit_bytes=32 * 1024 * 1024)


def _batch_spec(shape):
    return pl.BlockSpec((1,) + tuple(shape[1:]), lambda b: (b, 0, 0))


def _bcast_spec(shape):
    zeros = (0,) * len(shape)
    return pl.BlockSpec(tuple(shape), lambda b, z=zeros: z)


# ------------------------------------------------------------------
# Pallas kernels
# ------------------------------------------------------------------
def _conv3x3_acc(x_bf, shm_ref, w_ref):
    """x_bf: (H, W*Cin) bf16 unpadded activation tile.
    shm_ref: (2, H, H) bf16 row-shift matrices (down / up).
    w_ref:   (3, W*Cin, W*Co) bf16 folded per-ky tap matrices (kx shifts inside).
    Returns (H, W*Co) f32 = Conv2d 3x3, stride 1, pad 1 (bias-free)."""
    acc = jnp.dot(x_bf, w_ref[1], preferred_element_type=_F32)            # ky = 1
    x_dn = jnp.dot(shm_ref[0], x_bf, preferred_element_type=_F32).astype(_BF16)
    acc = acc + jnp.dot(x_dn, w_ref[0], preferred_element_type=_F32)      # ky = 0
    x_up = jnp.dot(shm_ref[1], x_bf, preferred_element_type=_F32).astype(_BF16)
    acc = acc + jnp.dot(x_up, w_ref[2], preferred_element_type=_F32)      # ky = 2
    return acc


def _channel_stats(acc, sel_ref):
    """Per-channel (sum, sum_sq) of a (H, W*Co) channels-flattened f32 tile."""
    red = jnp.concatenate(
        [jnp.sum(acc, axis=0, keepdims=True),
         jnp.sum(acc * acc, axis=0, keepdims=True)], axis=0)              # (2, W*Co)
    return jnp.dot(red, sel_ref[...], preferred_element_type=_F32)        # (2, Co)


def _up_conv1_kernel(x2_ref, in1_ref, ah_ref, mt_ref, brow_ref,
                     wa_ref, wb_ref, shm_ref, sel_ref, z_ref, st_ref):
    """Fused ConvTranspose2d(k=2,s=2) + bilinear resize + bias (in-register)
    + channel-concat Conv1 3x3 (split weights) + per-batch BN1 statistics.
    Conv bias b1 is dropped: cancelled exactly by training-mode BN mean."""
    x2 = x2_ref[0].astype(_BF16)                                          # (H2, W2*Ci)
    up = jnp.zeros(z_ref.shape[1:], _F32)                                 # (H, W*Co)
    for di in range(2):
        u = jnp.dot(ah_ref[di], x2, preferred_element_type=_F32).astype(_BF16)
        for dj in range(2):
            up = up + jnp.dot(u, mt_ref[2 * di + dj], preferred_element_type=_F32)
    up = up + brow_ref[...]                                               # deconv bias
    acc = (_conv3x3_acc(in1_ref[0], shm_ref, wa_ref)
           + _conv3x3_acc(up.astype(_BF16), shm_ref, wb_ref))
    z_ref[0] = acc.astype(z_ref.dtype)
    st_ref[0] = _channel_stats(acc, sel_ref)


def _conv2_kernel(z1_ref, sc_ref, sh_ref, w_ref, shm_ref, sel_ref, z_ref, st_ref):
    """BN1 + ReLU prologue (a1 never hits HBM) + Conv2 3x3 + BN2 statistics."""
    a1 = jnp.maximum(z1_ref[0].astype(_F32) * sc_ref[...] + sh_ref[...], 0.0)
    acc = _conv3x3_acc(a1.astype(_BF16), shm_ref, w_ref)
    z_ref[0] = acc.astype(z_ref.dtype)
    st_ref[0] = _channel_stats(acc, sel_ref)


def _bn_relu_kernel(z_ref, sc_ref, sh_ref, o_ref):
    o_ref[0] = jnp.maximum(z_ref[0] * sc_ref[...] + sh_ref[...], 0.0)


# ------------------------------------------------------------------
# pallas_call wrappers
# ------------------------------------------------------------------
def _up_conv1(x2, in1, ah, mt, brow, wa, wb, shm, sel, H, WCo, Co):
    N = x2.shape[0]
    return pl.pallas_call(
        _up_conv1_kernel,
        out_shape=(jax.ShapeDtypeStruct((N, H, WCo), _BF16),
                   jax.ShapeDtypeStruct((N, 2, Co), _F32)),
        grid=(N,),
        in_specs=[_batch_spec(x2.shape), _batch_spec(in1.shape),
                  _bcast_spec(ah.shape), _bcast_spec(mt.shape),
                  _bcast_spec(brow.shape), _bcast_spec(wa.shape),
                  _bcast_spec(wb.shape), _bcast_spec(shm.shape),
                  _bcast_spec(sel.shape)],
        out_specs=(pl.BlockSpec((1, H, WCo), lambda b: (b, 0, 0)),
                   pl.BlockSpec((1, 2, Co), lambda b: (b, 0, 0))),
        compiler_params=_compiler_params(),
    )(x2, in1, ah, mt, brow, wa, wb, shm, sel)


def _conv2(z1, sc, sh, wf, shm, sel, H, WCo, Co):
    N = z1.shape[0]
    return pl.pallas_call(
        _conv2_kernel,
        out_shape=(jax.ShapeDtypeStruct((N, H, WCo), _F32),
                   jax.ShapeDtypeStruct((N, 2, Co), _F32)),
        grid=(N,),
        in_specs=[_batch_spec(z1.shape), _bcast_spec(sc.shape),
                  _bcast_spec(sh.shape), _bcast_spec(wf.shape),
                  _bcast_spec(shm.shape), _bcast_spec(sel.shape)],
        out_specs=(pl.BlockSpec((1, H, WCo), lambda b: (b, 0, 0)),
                   pl.BlockSpec((1, 2, Co), lambda b: (b, 0, 0))),
        compiler_params=_compiler_params(),
    )(z1, sc, sh, wf, shm, sel)


def _bn_relu(z, sc, sh):
    N, H, WC = z.shape
    return pl.pallas_call(
        _bn_relu_kernel,
        out_shape=jax.ShapeDtypeStruct((N, H, WC), _F32),
        grid=(N,),
        in_specs=[_batch_spec(z.shape), _bcast_spec(sc.shape), _bcast_spec(sh.shape)],
        out_specs=pl.BlockSpec((1, H, WC), lambda b: (b, 0, 0)),
        compiler_params=_compiler_params(),
    )(z, sc, sh)


# ------------------------------------------------------------------
# forward
# ------------------------------------------------------------------
def _bn_coeffs(stats, gamma, beta, count, eps):
    s = jnp.sum(stats[:, 0, :], axis=0)
    ss = jnp.sum(stats[:, 1, :], axis=0)
    mean = s / count
    var = jnp.maximum(ss / count - mean * mean, 0.0)     # biased, as torch BN (train)
    scale = gamma * jax.lax.rsqrt(var + eps)
    shift = beta - mean * scale
    return scale, shift


@functools.partial(jax.jit, static_argnums=(3,))
def unet_up2_forward(params, input1, input2, output_lim):
    """input1: (N, C1, H, W) NCHW skip; input2: (N, in_size, H2, W2) NCHW coarse."""
    N, C1, Hs, Ws = input1.shape
    _, Ci, H2, W2 = input2.shape
    Co = params["up_b"].shape[0]
    Ho, Wo = output_lim
    assert (Hs, Ws) == (Ho, Wo)
    eps = 1e-5

    # ---- fused ConvTranspose2d + bilinear-resize constants --------------------
    Gh = bilinear_matrix(Ho, 2 * H2)                                    # (Ho, 2*H2)
    Gw = bilinear_matrix(Wo, 2 * W2)                                    # (Wo, 2*W2)
    ah = jnp.asarray(np.stack([Gh[:, 0::2], Gh[:, 1::2]], 0), _BF16)    # (2, Ho, H2)
    wd = params["up_w"]                                                 # (Ci, Co, 2, 2)
    mt = jnp.stack(
        [jnp.einsum("xw,kc->wkxc", jnp.asarray(Gw[:, dj::2]), wd[:, :, di, dj])
             .reshape(W2 * Ci, Wo * Co)
         for di in range(2) for dj in range(2)], 0).astype(_BF16)       # (4, ., .)
    brow = jnp.tile(params["up_b"], Wo).reshape(1, Wo * Co)

    # ---- folded conv weights / shift matrices / stat selector -----------------
    wa = _fold_conv_weight(params["w1"], 0, C1, Wo)           # skip-connection chans
    wb = _fold_conv_weight(params["w1"], C1, C1 + Co, Wo)     # upsampled chans
    w2f = _fold_conv_weight(params["w2"], 0, Co, Wo)
    shm = _row_shift_mats(Ho)                                 # (2, Ho, Ho)
    sel = jnp.tile(jnp.eye(Co, dtype=_F32), (Wo, 1))          # (Wo*Co, Co) selector
    # NOTE: params["b1"] / params["b2"] intentionally unused: a conv bias feeding
    # a training-mode BatchNorm is exactly cancelled by the mean subtraction.

    x2 = jnp.transpose(input2, (0, 2, 3, 1)).reshape(N, H2, W2 * Ci)
    in1 = jnp.transpose(input1, (0, 2, 3, 1)).reshape(N, Ho, Wo * C1).astype(_BF16)

    # ---- kernel A: upsample + concat-conv1 + BN1 stats -------------------------
    z1, st1 = _up_conv1(x2, in1, ah, mt, brow, wa, wb, shm, sel, Ho, Wo * Co, Co)
    cnt = N * Ho * Wo
    sc1, sh1 = _bn_coeffs(st1, params["g1"], params["be1"], cnt, eps)
    sc1r = jnp.tile(sc1, Wo).reshape(1, Wo * Co)
    sh1r = jnp.tile(sh1, Wo).reshape(1, Wo * Co)

    # ---- kernel B: BN1+ReLU prologue + conv2 + BN2 stats -----------------------
    z2, st2 = _conv2(z1, sc1r, sh1r, w2f, shm, sel, Ho, Wo * Co, Co)
    sc2, sh2 = _bn_coeffs(st2, params["g2"], params["be2"], cnt, eps)
    sc2r = jnp.tile(sc2, Wo).reshape(1, Wo * Co)
    sh2r = jnp.tile(sh2, Wo).reshape(1, Wo * Co)

    # ---- kernel C: final BN2 + ReLU --------------------------------------------
    a2 = _bn_relu(z2, sc2r, sh2r)                             # (N, Ho, Wo*Co) f32
    return jnp.transpose(a2.reshape(N, Ho, Wo, Co), (0, 3, 1, 2))       # NCHW


# ------------------------------------------------------------------
# pure-JAX f32 reference (for correctness verification only)
# ------------------------------------------------------------------
def _reference_forward(params, input1, input2, output_lim):
    hi = jax.lax.Precision.HIGHEST
    N, Ci, H2, W2 = input2.shape
    Co = params["up_b"].shape[0]
    Ho, Wo = output_lim
    eps = 1e-5
    # ConvTranspose2d(k=2, s=2)
    de = jnp.einsum("nchw,cokl->nohkwl", input2, params["up_w"], precision=hi)
    de = de.reshape(N, Co, 2 * H2, 2 * W2) + params["up_b"][None, :, None, None]
    # bilinear resize, align_corners=False (separable)
    Gh = jnp.asarray(bilinear_matrix(Ho, 2 * H2))
    Gw = jnp.asarray(bilinear_matrix(Wo, 2 * W2))
    up = jnp.einsum("or,ncrs,ps->ncop", Gh, de, Gw, precision=hi)
    x = jnp.concatenate([input1, up], axis=1)

    def conv_bn_relu(x, w, b, g, be):
        y = jax.lax.conv_general_dilated(
            x, w, window_strides=(1, 1), padding=((1, 1), (1, 1)),
            dimension_numbers=("NCHW", "OIHW", "NCHW"), precision=hi)
        y = y + b[None, :, None, None]
        mean = jnp.mean(y, axis=(0, 2, 3), keepdims=True)
        var = jnp.mean((y - mean) ** 2, axis=(0, 2, 3), keepdims=True)
        y = (y - mean) * jax.lax.rsqrt(var + eps)
        y = y * g[None, :, None, None] + be[None, :, None, None]
        return jnp.maximum(y, 0.0)

    x = conv_bn_relu(x, params["w1"], params["b1"], params["g1"], params["be1"])
    x = conv_bn_relu(x, params["w2"], params["b2"], params["g2"], params["be2"])
    return x


# ------------------------------------------------------------------
# Main
# ------------------------------------------------------------------
if __name__ == "__main__":
    in_size, out_size = 8, 4
    output_lim = (16, 16)
    # is_deconv=True branch (ConvTranspose2d upsampling).
    # TODO(synk): PixelShuffleBlock (is_deconv=False) branch not exercised here.

    key = jax.random.PRNGKey(0)
    ks = jax.random.split(key, 12)
    params = {
        "up_w": 0.1 * jax.random.normal(ks[0], (in_size, out_size, 2, 2), jnp.float32),
        "up_b": 0.1 * jax.random.normal(ks[1], (out_size,), jnp.float32),
        "w1":   0.1 * jax.random.normal(ks[2], (out_size, in_size, 3, 3), jnp.float32),
        "b1":   0.1 * jax.random.normal(ks[3], (out_size,), jnp.float32),  # BN-cancelled
        "g1":   1.0 + 0.1 * jax.random.normal(ks[4], (out_size,), jnp.float32),
        "be1":  0.1 * jax.random.normal(ks[5], (out_size,), jnp.float32),
        "w2":   0.1 * jax.random.normal(ks[6], (out_size, out_size, 3, 3), jnp.float32),
        "b2":   0.1 * jax.random.normal(ks[7], (out_size,), jnp.float32),  # BN-cancelled
        "g2":   1.0 + 0.1 * jax.random.normal(ks[8], (out_size,), jnp.float32),
        "be2":  0.1 * jax.random.normal(ks[9], (out_size,), jnp.float32),
    }

    # input1: skip connection (N, in_size - out_size, H, W); input2: coarse map.
    input1 = jax.random.normal(ks[10], (2, in_size - out_size, 16, 16), jnp.float32)
    input2 = jax.random.normal(ks[11], (2, in_size, 7, 7), jnp.float32)

    out = unet_up2_forward(params, input1, input2, output_lim)
    out = jax.block_until_ready(out)
    assert out.shape == (2, out_size, 16, 16)
    assert bool(jnp.all(jnp.isfinite(out)))

    ref = _reference_forward(params, input1, input2, output_lim)
    err = float(jnp.max(jnp.abs(out - ref)))
    assert err < 3e-1, f"max abs error vs reference: {err}"

    print("KERNEL_OK")
</pallas_src>

<mosaic_0001>
module attributes {stable_mosaic.version = 11 : i64} {
  func.func @_up_conv1_kernel(%arg0: i32, %arg1: memref<1x7x56xf32, #tpu.memory_space<vmem>>, %arg2: memref<1x16x64xbf16, #tpu.memory_space<vmem>>, %arg3: memref<2x16x7xbf16, #tpu.memory_space<vmem>>, %arg4: memref<4x56x64xbf16, #tpu.memory_space<vmem>>, %arg5: memref<1x64xf32, #tpu.memory_space<vmem>>, %arg6: memref<3x64x64xbf16, #tpu.memory_space<vmem>>, %arg7: memref<3x64x64xbf16, #tpu.memory_space<vmem>>, %arg8: memref<2x16x16xbf16, #tpu.memory_space<vmem>>, %arg9: memref<64x4xf32, #tpu.memory_space<vmem>>, %arg10: memref<1x16x64xbf16, #tpu.memory_space<vmem>>, %arg11: memref<1x2x4xf32, #tpu.memory_space<vmem>>) attributes {dimension_semantics = [#tpu.dimension_semantics<parallel>], iteration_bounds = array<i64: 2>, scalar_prefetch = 0 : i64, scratch_operands = 0 : i64, tpu.core_type = #tpu.core_type<tc>, window_params = [{transform_indices = @transform_0, window_bounds = array<i64: 1, 7, 56>}, {transform_indices = @transform_1, window_bounds = array<i64: 1, 16, 64>}, {pipeline_mode = #tpu.pipeline_mode<synchronous>, transform_indices = @transform_2, window_bounds = array<i64: 2, 16, 7>}, {pipeline_mode = #tpu.pipeline_mode<synchronous>, transform_indices = @transform_3, window_bounds = array<i64: 4, 56, 64>}, {pipeline_mode = #tpu.pipeline_mode<synchronous>, transform_indices = @transform_4, window_bounds = array<i64: 1, 64>}, {pipeline_mode = #tpu.pipeline_mode<synchronous>, transform_indices = @transform_5, window_bounds = array<i64: 3, 64, 64>}, {pipeline_mode = #tpu.pipeline_mode<synchronous>, transform_indices = @transform_6, window_bounds = array<i64: 3, 64, 64>}, {pipeline_mode = #tpu.pipeline_mode<synchronous>, transform_indices = @transform_7, window_bounds = array<i64: 2, 16, 16>}, {pipeline_mode = #tpu.pipeline_mode<synchronous>, transform_indices = @transform_8, window_bounds = array<i64: 64, 4>}, {transform_indices = @transform_9, window_bounds = array<i64: 1, 16, 64>}, {transform_indices = @transform_10, window_bounds = array<i64: 1, 2, 4>}]} {
    %c0 = arith.constant 0 : index
    %c0_0 = arith.constant 0 : index
    %c0_1 = arith.constant 0 : index
    %0 = vector.load %arg1[%c0, %c0_0, %c0_1] : memref<1x7x56xf32, #tpu.memory_space<vmem>>, vector<1x7x56xf32>
    %1 = vector.shape_cast %0 : vector<1x7x56xf32> to vector<7x56xf32>
    %2 = arith.truncf %1 : vector<7x56xf32> to vector<7x56xbf16>
    %cst = arith.constant 0.000000e+00 : f32
    %3 = vector.broadcast %cst : f32 to vector<16x64xf32>
    %c0_2 = arith.constant 0 : index
    %c0_3 = arith.constant 0 : index
    %c0_4 = arith.constant 0 : index
    %4 = vector.load %arg3[%c0_2, %c0_3, %c0_4] : memref<2x16x7xbf16, #tpu.memory_space<vmem>>, vector<1x16x7xbf16>
    %5 = vector.shape_cast %4 : vector<1x16x7xbf16> to vector<16x7xbf16>
    %cst_5 = arith.constant dense<0.000000e+00> : vector<16x56xf32>
    %6 = tpu.matmul %5, %2, %cst_5 {dimension_numbers = #tpu.dot_dimension_numbers<[1], [0], [0], [1], [0, 0, 1, 1], [], []>} : vector<16x7xbf16>, vector<7x56xbf16>, vector<16x56xf32> -> vector<16x56xf32>
    %7 = arith.truncf %6 : vector<16x56xf32> to vector<16x56xbf16>
    %c0_6 = arith.constant 0 : index
    %c0_7 = arith.constant 0 : index
    %c0_8 = arith.constant 0 : index
    %8 = vector.load %arg4[%c0_6, %c0_7, %c0_8] : memref<4x56x64xbf16, #tpu.memory_space<vmem>>, vector<1x56x64xbf16>
    %9 = vector.shape_cast %8 : vector<1x56x64xbf16> to vector<56x64xbf16>
    %cst_9 = arith.constant dense<0.000000e+00> : vector<16x64xf32>
    %10 = tpu.matmul %7, %9, %cst_9 {dimension_numbers = #tpu.dot_dimension_numbers<[1], [0], [0], [1], [0, 0, 1, 1], [], []>} : vector<16x56xbf16>, vector<56x64xbf16>, vector<16x64xf32> -> vector<16x64xf32>
    %11 = arith.addf %3, %10 : vector<16x64xf32>
    %c1 = arith.constant 1 : index
    %c0_10 = arith.constant 0 : index
    %c0_11 = arith.constant 0 : index
    %12 = vector.load %arg4[%c1, %c0_10, %c0_11] : memref<4x56x64xbf16, #tpu.memory_space<vmem>>, vector<1x56x64xbf16>
    %13 = vector.shape_cast %12 : vector<1x56x64xbf16> to vector<56x64xbf16>
    %cst_12 = arith.constant dense<0.000000e+00> : vector<16x64xf32>
    %14 = tpu.matmul %7, %13, %cst_12 {dimension_numbers = #tpu.dot_dimension_numbers<[1], [0], [0], [1], [0, 0, 1, 1], [], []>} : vector<16x56xbf16>, vector<56x64xbf16>, vector<16x64xf32> -> vector<16x64xf32>
    %15 = arith.addf %11, %14 : vector<16x64xf32>
    %c1_13 = arith.constant 1 : index
    %c0_14 = arith.constant 0 : index
    %c0_15 = arith.constant 0 : index
    %16 = vector.load %arg3[%c1_13, %c0_14, %c0_15] : memref<2x16x7xbf16, #tpu.memory_space<vmem>>, vector<1x16x7xbf16>
    %17 = vector.shape_cast %16 : vector<1x16x7xbf16> to vector<16x7xbf16>
    %cst_16 = arith.constant dense<0.000000e+00> : vector<16x56xf32>
    %18 = tpu.matmul %17, %2, %cst_16 {dimension_numbers = #tpu.dot_dimension_numbers<[1], [0], [0], [1], [0, 0, 1, 1], [], []>} : vector<16x7xbf16>, vector<7x56xbf16>, vector<16x56xf32> -> vector<16x56xf32>
    %19 = arith.truncf %18 : vector<16x56xf32> to vector<16x56xbf16>
    %c2 = arith.constant 2 : index
    %c0_17 = arith.constant 0 : index
    %c0_18 = arith.constant 0 : index
    %20 = vector.load %arg4[%c2, %c0_17, %c0_18] : memref<4x56x64xbf16, #tpu.memory_space<vmem>>, vector<1x56x64xbf16>
    %21 = vector.shape_cast %20 : vector<1x56x64xbf16> to vector<56x64xbf16>
    %cst_19 = arith.constant dense<0.000000e+00> : vector<16x64xf32>
    %22 = tpu.matmul %19, %21, %cst_19 {dimension_numbers = #tpu.dot_dimension_numbers<[1], [0], [0], [1], [0, 0, 1, 1], [], []>} : vector<16x56xbf16>, vector<56x64xbf16>, vector<16x64xf32> -> vector<16x64xf32>
    %23 = arith.addf %15, %22 : vector<16x64xf32>
    %c3 = arith.constant 3 : index
    %c0_20 = arith.constant 0 : index
    %c0_21 = arith.constant 0 : index
    %24 = vector.load %arg4[%c3, %c0_20, %c0_21] : memref<4x56x64xbf16, #tpu.memory_space<vmem>>, vector<1x56x64xbf16>
    %25 = vector.shape_cast %24 : vector<1x56x64xbf16> to vector<56x64xbf16>
    %cst_22 = arith.constant dense<0.000000e+00> : vector<16x64xf32>
    %26 = tpu.matmul %19, %25, %cst_22 {dimension_numbers = #tpu.dot_dimension_numbers<[1], [0], [0], [1], [0, 0, 1, 1], [], []>} : vector<16x56xbf16>, vector<56x64xbf16>, vector<16x64xf32> -> vector<16x64xf32>
    %27 = arith.addf %23, %26 : vector<16x64xf32>
    %c0_23 = arith.constant 0 : index
    %c0_24 = arith.constant 0 : index
    %28 = vector.load %arg5[%c0_23, %c0_24] : memref<1x64xf32, #tpu.memory_space<vmem>>, vector<1x64xf32>
    %29 = vector.broadcast %28 : vector<1x64xf32> to vector<16x64xf32>
    %30 = arith.addf %27, %29 : vector<16x64xf32>
    %c0_25 = arith.constant 0 : index
    %c0_26 = arith.constant 0 : index
    %c0_27 = arith.constant 0 : index
    %31 = vector.load %arg2[%c0_25, %c0_26, %c0_27] : memref<1x16x64xbf16, #tpu.memory_space<vmem>>, vector<1x16x64xbf16>
    %32 = vector.shape_cast %31 : vector<1x16x64xbf16> to vector<16x64xbf16>
    %c1_28 = arith.constant 1 : index
    %c0_29 = arith.constant 0 : index
    %c0_30 = arith.constant 0 : index
    %33 = vector.load %arg6[%c1_28, %c0_29, %c0_30] : memref<3x64x64xbf16, #tpu.memory_space<vmem>>, vector<1x64x64xbf16>
    %34 = vector.shape_cast %33 : vector<1x64x64xbf16> to vector<64x64xbf16>
    %cst_31 = arith.constant dense<0.000000e+00> : vector<16x64xf32>
    %35 = tpu.matmul %32, %34, %cst_31 {dimension_numbers = #tpu.dot_dimension_numbers<[1], [0], [0], [1], [0, 0, 1, 1], [], []>} : vector<16x64xbf16>, vector<64x64xbf16>, vector<16x64xf32> -> vector<16x64xf32>
    %c0_32 = arith.constant 0 : index
    %c0_33 = arith.constant 0 : index
    %c0_34 = arith.constant 0 : index
    %36 = vector.load %arg8[%c0_32, %c0_33, %c0_34] : memref<2x16x16xbf16, #tpu.memory_space<vmem>>, vector<1x16x16xbf16>
    %37 = vector.shape_cast %36 : vector<1x16x16xbf16> to vector<16x16xbf16>
    %cst_35 = arith.constant dense<0.000000e+00> : vector<16x64xf32>
    %38 = tpu.matmul %37, %32, %cst_35 {dimension_numbers = #tpu.dot_dimension_numbers<[1], [0], [0], [1], [0, 0, 1, 1], [], []>} : vector<16x16xbf16>, vector<16x64xbf16>, vector<16x64xf32> -> vector<16x64xf32>
    %39 = arith.truncf %38 : vector<16x64xf32> to vector<16x64xbf16>
    %c0_36 = arith.constant 0 : index
    %c0_37 = arith.constant 0 : index
    %c0_38 = arith.constant 0 : index
    %40 = vector.load %arg6[%c0_36, %c0_37, %c0_38] : memref<3x64x64xbf16, #tpu.memory_space<vmem>>, vector<1x64x64xbf16>
    %41 = vector.shape_cast %40 : vector<1x64x64xbf16> to vector<64x64xbf16>
    %cst_39 = arith.constant dense<0.000000e+00> : vector<16x64xf32>
    %42 = tpu.matmul %39, %41, %cst_39 {dimension_numbers = #tpu.dot_dimension_numbers<[1], [0], [0], [1], [0, 0, 1, 1], [], []>} : vector<16x64xbf16>, vector<64x64xbf16>, vector<16x64xf32> -> vector<16x64xf32>
    %43 = arith.addf %35, %42 : vector<16x64xf32>
    %c1_40 = arith.constant 1 : index
    %c0_41 = arith.constant 0 : index
    %c0_42 = arith.constant 0 : index
    %44 = vector.load %arg8[%c1_40, %c0_41, %c0_42] : memref<2x16x16xbf16, #tpu.memory_space<vmem>>, vector<1x16x16xbf16>
    %45 = vector.shape_cast %44 : vector<1x16x16xbf16> to vector<16x16xbf16>
    %cst_43 = arith.constant dense<0.000000e+00> : vector<16x64xf32>
    %46 = tpu.matmul %45, %32, %cst_43 {dimension_numbers = #tpu.dot_dimension_numbers<[1], [0], [0], [1], [0, 0, 1, 1], [], []>} : vector<16x16xbf16>, vector<16x64xbf16>, vector<16x64xf32> -> vector<16x64xf32>
    %47 = arith.truncf %46 : vector<16x64xf32> to vector<16x64xbf16>
    %c2_44 = arith.constant 2 : index
    %c0_45 = arith.constant 0 : index
    %c0_46 = arith.constant 0 : index
    %48 = vector.load %arg6[%c2_44, %c0_45, %c0_46] : memref<3x64x64xbf16, #tpu.memory_space<vmem>>, vector<1x64x64xbf16>
    %49 = vector.shape_cast %48 : vector<1x64x64xbf16> to vector<64x64xbf16>
    %cst_47 = arith.constant dense<0.000000e+00> : vector<16x64xf32>
    %50 = tpu.matmul %47, %49, %cst_47 {dimension_numbers = #tpu.dot_dimension_numbers<[1], [0], [0], [1], [0, 0, 1, 1], [], []>} : vector<16x64xbf16>, vector<64x64xbf16>, vector<16x64xf32> -> vector<16x64xf32>
    %51 = arith.addf %43, %50 : vector<16x64xf32>
    %52 = arith.truncf %30 : vector<16x64xf32> to vector<16x64xbf16>
    %c1_48 = arith.constant 1 : index
    %c0_49 = arith.constant 0 : index
    %c0_50 = arith.constant 0 : index
    %53 = vector.load %arg7[%c1_48, %c0_49, %c0_50] : memref<3x64x64xbf16, #tpu.memory_space<vmem>>, vector<1x64x64xbf16>
    %54 = vector.shape_cast %53 : vector<1x64x64xbf16> to vector<64x64xbf16>
    %cst_51 = arith.constant dense<0.000000e+00> : vector<16x64xf32>
    %55 = tpu.matmul %52, %54, %cst_51 {dimension_numbers = #tpu.dot_dimension_numbers<[1], [0], [0], [1], [0, 0, 1, 1], [], []>} : vector<16x64xbf16>, vector<64x64xbf16>, vector<16x64xf32> -> vector<16x64xf32>
    %c0_52 = arith.constant 0 : index
    %c0_53 = arith.constant 0 : index
    %c0_54 = arith.constant 0 : index
    %56 = vector.load %arg8[%c0_52, %c0_53, %c0_54] : memref<2x16x16xbf16, #tpu.memory_space<vmem>>, vector<1x16x16xbf16>
    %57 = vector.shape_cast %56 : vector<1x16x16xbf16> to vector<16x16xbf16>
    %cst_55 = arith.constant dense<0.000000e+00> : vector<16x64xf32>
    %58 = tpu.matmul %57, %52, %cst_55 {dimension_numbers = #tpu.dot_dimension_numbers<[1], [0], [0], [1], [0, 0, 1, 1], [], []>} : vector<16x16xbf16>, vector<16x64xbf16>, vector<16x64xf32> -> vector<16x64xf32>
    %59 = arith.truncf %58 : vector<16x64xf32> to vector<16x64xbf16>
    %c0_56 = arith.constant 0 : index
    %c0_57 = arith.constant 0 : index
    %c0_58 = arith.constant 0 : index
    %60 = vector.load %arg7[%c0_56, %c0_57, %c0_58] : memref<3x64x64xbf16, #tpu.memory_space<vmem>>, vector<1x64x64xbf16>
    %61 = vector.shape_cast %60 : vector<1x64x64xbf16> to vector<64x64xbf16>
    %cst_59 = arith.constant dense<0.000000e+00> : vector<16x64xf32>
    %62 = tpu.matmul %59, %61, %cst_59 {dimension_numbers = #tpu.dot_dimension_numbers<[1], [0], [0], [1], [0, 0, 1, 1], [], []>} : vector<16x64xbf16>, vector<64x64xbf16>, vector<16x64xf32> -> vector<16x64xf32>
    %63 = arith.addf %55, %62 : vector<16x64xf32>
    %c1_60 = arith.constant 1 : index
    %c0_61 = arith.constant 0 : index
    %c0_62 = arith.constant 0 : index
    %64 = vector.load %arg8[%c1_60, %c0_61, %c0_62] : memref<2x16x16xbf16, #tpu.memory_space<vmem>>, vector<1x16x16xbf16>
    %65 = vector.shape_cast %64 : vector<1x16x16xbf16> to vector<16x16xbf16>
    %cst_63 = arith.constant dense<0.000000e+00> : vector<16x64xf32>
    %66 = tpu.matmul %65, %52, %cst_63 {dimension_numbers = #tpu.dot_dimension_numbers<[1], [0], [0], [1], [0, 0, 1, 1], [], []>} : vector<16x16xbf16>, vector<16x64xbf16>, vector<16x64xf32> -> vector<16x64xf32>
    %67 = arith.truncf %66 : vector<16x64xf32> to vector<16x64xbf16>
    %c2_64 = arith.constant 2 : index
    %c0_65 = arith.constant 0 : index
    %c0_66 = arith.constant 0 : index
    %68 = vector.load %arg7[%c2_64, %c0_65, %c0_66] : memref<3x64x64xbf16, #tpu.memory_space<vmem>>, vector<1x64x64xbf16>
    %69 = vector.shape_cast %68 : vector<1x64x64xbf16> to vector<64x64xbf16>
    %cst_67 = arith.constant dense<0.000000e+00> : vector<16x64xf32>
    %70 = tpu.matmul %67, %69, %cst_67 {dimension_numbers = #tpu.dot_dimension_numbers<[1], [0], [0], [1], [0, 0, 1, 1], [], []>} : vector<16x64xbf16>, vector<64x64xbf16>, vector<16x64xf32> -> vector<16x64xf32>
    %71 = arith.addf %63, %70 : vector<16x64xf32>
    %72 = arith.addf %51, %71 : vector<16x64xf32>
    %73 = arith.truncf %72 : vector<16x64xf32> to vector<16x64xbf16>
    %c0_68 = arith.constant 0 : index
    %c0_69 = arith.constant 0 : index
    %c0_70 = arith.constant 0 : index
    %74 = vector.load %arg10[%c0_68, %c0_69, %c0_70] : memref<1x16x64xbf16, #tpu.memory_space<vmem>>, vector<1x16x64xbf16>
    %75 = vector.shape_cast %74 : vector<1x16x64xbf16> to vector<16x64xbf16>
    %76 = vector.shape_cast %73 : vector<16x64xbf16> to vector<1x16x64xbf16>
    tpu.vector_store %arg10[%c0_68, %c0_69, %c0_70], %76 {strides = array<i32>} : memref<1x16x64xbf16, #tpu.memory_space<vmem>>, vector<1x16x64xbf16>,
    %cst_71 = arith.constant dense<0.000000e+00> : vector<64xf32>
    %77 = vector.multi_reduction <add>, %72, %cst_71 [0] : vector<16x64xf32> to vector<64xf32>
    %78 = vector.shape_cast %77 : vector<64xf32> to vector<1x64xf32>
    %79 = arith.mulf %72, %72 : vector<16x64xf32>
    %cst_72 = arith.constant dense<0.000000e+00> : vector<64xf32>
    %80 = vector.multi_reduction <add>, %79, %cst_72 [0] : vector<16x64xf32> to vector<64xf32>
    %81 = vector.shape_cast %80 : vector<64xf32> to vector<1x64xf32>
    %82 = tpu.concatenate %78, %81 in 0 : vector<1x64xf32>, vector<1x64xf32> -> vector<2x64xf32>
    %c0_73 = arith.constant 0 : index
    %c0_74 = arith.constant 0 : index
    %83 = vector.load %arg9[%c0_73, %c0_74] : memref<64x4xf32, #tpu.memory_space<vmem>>, vector<64x4xf32>
    %cst_75 = arith.constant dense<0.000000e+00> : vector<2x4xf32>
    %84 = tpu.matmul %82, %83, %cst_75 {dimension_numbers = #tpu.dot_dimension_numbers<[1], [0], [0], [1], [0, 0, 1, 1], [], []>} : vector<2x64xf32>, vector<64x4xf32>, vector<2x4xf32> -> vector<2x4xf32>
    %c0_76 = arith.constant 0 : index
    %c0_77 = arith.constant 0 : index
    %c0_78 = arith.constant 0 : index
    %85 = vector.load %arg11[%c0_76, %c0_77, %c0_78] : memref<1x2x4xf32, #tpu.memory_space<vmem>>, vector<1x2x4xf32>
    %86 = vector.shape_cast %85 : vector<1x2x4xf32> to vector<2x4xf32>
    %87 = vector.shape_cast %84 : vector<2x4xf32> to vector<1x2x4xf32>
    tpu.vector_store %arg11[%c0_76, %c0_77, %c0_78], %87 {strides = array<i32>} : memref<1x2x4xf32, #tpu.memory_space<vmem>>, vector<1x2x4xf32>,
    return
  }
  func.func @transform_0(%arg0: i32) -> (i32, i32, i32) {
    %c0_i32 = arith.constant 0 : i32
    %c0_i32_0 = arith.constant 0 : i32
    %c0_i32_1 = arith.constant 0 : i32
    return %arg0, %c0_i32, %c0_i32_0 : i32, i32, i32
  }
  func.func @transform_1(%arg0: i32) -> (i32, i32, i32) {
    %c0_i32 = arith.constant 0 : i32
    %c0_i32_0 = arith.constant 0 : i32
    %c0_i32_1 = arith.constant 0 : i32
    return %arg0, %c0_i32, %c0_i32_0 : i32, i32, i32
  }
  func.func @transform_2(%arg0: i32) -> (i32, i32, i32) {
    %c0_i32 = arith.constant 0 : i32
    %c0_i32_0 = arith.constant 0 : i32
    %c0_i32_1 = arith.constant 0 : i32
    %c0_i32_2 = arith.constant 0 : i32
    return %c0_i32, %c0_i32_0, %c0_i32_1 : i32, i32, i32
  }
  func.func @transform_3(%arg0: i32) -> (i32, i32, i32) {
    %c0_i32 = arith.constant 0 : i32
    %c0_i32_0 = arith.constant 0 : i32
    %c0_i32_1 = arith.constant 0 : i32
    %c0_i32_2 = arith.constant 0 : i32
    return %c0_i32, %c0_i32_0, %c0_i32_1 : i32, i32, i32
  }
  func.func @transform_4(%arg0: i32) -> (i32, i32) {
    %c0_i32 = arith.constant 0 : i32
    %c0_i32_0 = arith.constant 0 : i32
    %c0_i32_1 = arith.constant 0 : i32
    return %c0_i32, %c0_i32_0 : i32, i32
  }
  func.func @transform_5(%arg0: i32) -> (i32, i32, i32) {
    %c0_i32 = arith.constant 0 : i32
    %c0_i32_0 = arith.constant 0 : i32
    %c0_i32_1 = arith.constant 0 : i32
    %c0_i32_2 = arith.constant 0 : i32
    return %c0_i32, %c0_i32_0, %c0_i32_1 : i32, i32, i32
  }
  func.func @transform_6(%arg0: i32) -> (i32, i32, i32) {
    %c0_i32 = arith.constant 0 : i32
    %c0_i32_0 = arith.constant 0 : i32
    %c0_i32_1 = arith.constant 0 : i32
    %c0_i32_2 = arith.constant 0 : i32
    return %c0_i32, %c0_i32_0, %c0_i32_1 : i32, i32, i32
  }
  func.func @transform_7(%arg0: i32) -> (i32, i32, i32) {
    %c0_i32 = arith.constant 0 : i32
    %c0_i32_0 = arith.constant 0 : i32
    %c0_i32_1 = arith.constant 0 : i32
    %c0_i32_2 = arith.constant 0 : i32
    return %c0_i32, %c0_i32_0, %c0_i32_1 : i32, i32, i32
  }
  func.func @transform_8(%arg0: i32) -> (i32, i32) {
    %c0_i32 = arith.constant 0 : i32
    %c0_i32_0 = arith.constant 0 : i32
    %c0_i32_1 = arith.constant 0 : i32
    return %c0_i32, %c0_i32_0 : i32, i32
  }
  func.func @transform_9(%arg0: i32) -> (i32, i32, i32) {
    %c0_i32 = arith.constant 0 : i32
    %c0_i32_0 = arith.constant 0 : i32
    %c0_i32_1 = arith.constant 0 : i32
    return %arg0, %c0_i32, %c0_i32_0 : i32, i32, i32
  }
  func.func @transform_10(%arg0: i32) -> (i32, i32, i32) {
    %c0_i32 = arith.constant 0 : i32
    %c0_i32_0 = arith.constant 0 : i32
    %c0_i32_1 = arith.constant 0 : i32
    return %arg0, %c0_i32, %c0_i32_0 : i32, i32, i32
  }
}

module attributes {stable_mosaic.version = 11 : i64} {
  func.func @_conv2_kernel(%arg0: i32, %arg1: memref<1x16x64xbf16, #tpu.memory_space<vmem>>, %arg2: memref<1x64xf32, #tpu.memory_space<vmem>>, %arg3: memref<1x64xf32, #tpu.memory_space<vmem>>, %arg4: memref<3x64x64xbf16, #tpu.memory_space<vmem>>, %arg5: memref<2x16x16xbf16, #tpu.memory_space<vmem>>, %arg6: memref<64x4xf32, #tpu.memory_space<vmem>>, %arg7: memref<1x16x64xf32, #tpu.memory_space<vmem>>, %arg8: memref<1x2x4xf32, #tpu.memory_space<vmem>>) attributes {dimension_semantics = [#tpu.dimension_semantics<parallel>], iteration_bounds = array<i64: 2>, scalar_prefetch = 0 : i64, scratch_operands = 0 : i64, tpu.core_type = #tpu.core_type<tc>, window_params = [{transform_indices = @transform_0, window_bounds = array<i64: 1, 16, 64>}, {pipeline_mode = #tpu.pipeline_mode<synchronous>, transform_indices = @transform_1, window_bounds = array<i64: 1, 64>}, {pipeline_mode = #tpu.pipeline_mode<synchronous>, transform_indices = @transform_2, window_bounds = array<i64: 1, 64>}, {pipeline_mode = #tpu.pipeline_mode<synchronous>, transform_indices = @transform_3, window_bounds = array<i64: 3, 64, 64>}, {pipeline_mode = #tpu.pipeline_mode<synchronous>, transform_indices = @transform_4, window_bounds = array<i64: 2, 16, 16>}, {pipeline_mode = #tpu.pipeline_mode<synchronous>, transform_indices = @transform_5, window_bounds = array<i64: 64, 4>}, {transform_indices = @transform_6, window_bounds = array<i64: 1, 16, 64>}, {transform_indices = @transform_7, window_bounds = array<i64: 1, 2, 4>}]} {
    %c0 = arith.constant 0 : index
    %c0_0 = arith.constant 0 : index
    %c0_1 = arith.constant 0 : index
    %0 = vector.load %arg1[%c0, %c0_0, %c0_1] : memref<1x16x64xbf16, #tpu.memory_space<vmem>>, vector<1x16x64xbf16>
    %1 = vector.shape_cast %0 : vector<1x16x64xbf16> to vector<16x64xbf16>
    %2 = arith.extf %1 : vector<16x64xbf16> to vector<16x64xf32>
    %c0_2 = arith.constant 0 : index
    %c0_3 = arith.constant 0 : index
    %3 = vector.load %arg2[%c0_2, %c0_3] : memref<1x64xf32, #tpu.memory_space<vmem>>, vector<1x64xf32>
    %4 = vector.broadcast %3 : vector<1x64xf32> to vector<16x64xf32>
    %5 = arith.mulf %2, %4 : vector<16x64xf32>
    %c0_4 = arith.constant 0 : index
    %c0_5 = arith.constant 0 : index
    %6 = vector.load %arg3[%c0_4, %c0_5] : memref<1x64xf32, #tpu.memory_space<vmem>>, vector<1x64xf32>
    %7 = vector.broadcast %6 : vector<1x64xf32> to vector<16x64xf32>
    %8 = arith.addf %5, %7 : vector<16x64xf32>
    %cst = arith.constant 0.000000e+00 : f32
    %9 = vector.broadcast %cst : f32 to vector<16x64xf32>
    %10 = arith.maximumf %8, %9 : vector<16x64xf32>
    %11 = arith.truncf %10 : vector<16x64xf32> to vector<16x64xbf16>
    %c1 = arith.constant 1 : index
    %c0_6 = arith.constant 0 : index
    %c0_7 = arith.constant 0 : index
    %12 = vector.load %arg4[%c1, %c0_6, %c0_7] : memref<3x64x64xbf16, #tpu.memory_space<vmem>>, vector<1x64x64xbf16>
    %13 = vector.shape_cast %12 : vector<1x64x64xbf16> to vector<64x64xbf16>
    %cst_8 = arith.constant dense<0.000000e+00> : vector<16x64xf32>
    %14 = tpu.matmul %11, %13, %cst_8 {dimension_numbers = #tpu.dot_dimension_numbers<[1], [0], [0], [1], [0, 0, 1, 1], [], []>} : vector<16x64xbf16>, vector<64x64xbf16>, vector<16x64xf32> -> vector<16x64xf32>
    %c0_9 = arith.constant 0 : index
    %c0_10 = arith.constant 0 : index
    %c0_11 = arith.constant 0 : index
    %15 = vector.load %arg5[%c0_9, %c0_10, %c0_11] : memref<2x16x16xbf16, #tpu.memory_space<vmem>>, vector<1x16x16xbf16>
    %16 = vector.shape_cast %15 : vector<1x16x16xbf16> to vector<16x16xbf16>
    %cst_12 = arith.constant dense<0.000000e+00> : vector<16x64xf32>
    %17 = tpu.matmul %16, %11, %cst_12 {dimension_numbers = #tpu.dot_dimension_numbers<[1], [0], [0], [1], [0, 0, 1, 1], [], []>} : vector<16x16xbf16>, vector<16x64xbf16>, vector<16x64xf32> -> vector<16x64xf32>
    %18 = arith.truncf %17 : vector<16x64xf32> to vector<16x64xbf16>
    %c0_13 = arith.constant 0 : index
    %c0_14 = arith.constant 0 : index
    %c0_15 = arith.constant 0 : index
    %19 = vector.load %arg4[%c0_13, %c0_14, %c0_15] : memref<3x64x64xbf16, #tpu.memory_space<vmem>>, vector<1x64x64xbf16>
    %20 = vector.shape_cast %19 : vector<1x64x64xbf16> to vector<64x64xbf16>
    %cst_16 = arith.constant dense<0.000000e+00> : vector<16x64xf32>
    %21 = tpu.matmul %18, %20, %cst_16 {dimension_numbers = #tpu.dot_dimension_numbers<[1], [0], [0], [1], [0, 0, 1, 1], [], []>} : vector<16x64xbf16>, vector<64x64xbf16>, vector<16x64xf32> -> vector<16x64xf32>
    %22 = arith.addf %14, %21 : vector<16x64xf32>
    %c1_17 = arith.constant 1 : index
    %c0_18 = arith.constant 0 : index
    %c0_19 = arith.constant 0 : index
    %23 = vector.load %arg5[%c1_17, %c0_18, %c0_19] : memref<2x16x16xbf16, #tpu.memory_space<vmem>>, vector<1x16x16xbf16>
    %24 = vector.shape_cast %23 : vector<1x16x16xbf16> to vector<16x16xbf16>
    %cst_20 = arith.constant dense<0.000000e+00> : vector<16x64xf32>
    %25 = tpu.matmul %24, %11, %cst_20 {dimension_numbers = #tpu.dot_dimension_numbers<[1], [0], [0], [1], [0, 0, 1, 1], [], []>} : vector<16x16xbf16>, vector<16x64xbf16>, vector<16x64xf32> -> vector<16x64xf32>
    %26 = arith.truncf %25 : vector<16x64xf32> to vector<16x64xbf16>
    %c2 = arith.constant 2 : index
    %c0_21 = arith.constant 0 : index
    %c0_22 = arith.constant 0 : index
    %27 = vector.load %arg4[%c2, %c0_21, %c0_22] : memref<3x64x64xbf16, #tpu.memory_space<vmem>>, vector<1x64x64xbf16>
    %28 = vector.shape_cast %27 : vector<1x64x64xbf16> to vector<64x64xbf16>
    %cst_23 = arith.constant dense<0.000000e+00> : vector<16x64xf32>
    %29 = tpu.matmul %26, %28, %cst_23 {dimension_numbers = #tpu.dot_dimension_numbers<[1], [0], [0], [1], [0, 0, 1, 1], [], []>} : vector<16x64xbf16>, vector<64x64xbf16>, vector<16x64xf32> -> vector<16x64xf32>
    %30 = arith.addf %22, %29 : vector<16x64xf32>
    %c0_24 = arith.constant 0 : index
    %c0_25 = arith.constant 0 : index
    %c0_26 = arith.constant 0 : index
    %31 = vector.load %arg7[%c0_24, %c0_25, %c0_26] : memref<1x16x64xf32, #tpu.memory_space<vmem>>, vector<1x16x64xf32>
    %32 = vector.shape_cast %31 : vector<1x16x64xf32> to vector<16x64xf32>
    %33 = vector.shape_cast %30 : vector<16x64xf32> to vector<1x16x64xf32>
    tpu.vector_store %arg7[%c0_24, %c0_25, %c0_26], %33 {strides = array<i32>} : memref<1x16x64xf32, #tpu.memory_space<vmem>>, vector<1x16x64xf32>,
    %cst_27 = arith.constant dense<0.000000e+00> : vector<64xf32>
    %34 = vector.multi_reduction <add>, %30, %cst_27 [0] : vector<16x64xf32> to vector<64xf32>
    %35 = vector.shape_cast %34 : vector<64xf32> to vector<1x64xf32>
    %36 = arith.mulf %30, %30 : vector<16x64xf32>
    %cst_28 = arith.constant dense<0.000000e+00> : vector<64xf32>
    %37 = vector.multi_reduction <add>, %36, %cst_28 [0] : vector<16x64xf32> to vector<64xf32>
    %38 = vector.shape_cast %37 : vector<64xf32> to vector<1x64xf32>
    %39 = tpu.concatenate %35, %38 in 0 : vector<1x64xf32>, vector<1x64xf32> -> vector<2x64xf32>
    %c0_29 = arith.constant 0 : index
    %c0_30 = arith.constant 0 : index
    %40 = vector.load %arg6[%c0_29, %c0_30] : memref<64x4xf32, #tpu.memory_space<vmem>>, vector<64x4xf32>
    %cst_31 = arith.constant dense<0.000000e+00> : vector<2x4xf32>
    %41 = tpu.matmul %39, %40, %cst_31 {dimension_numbers = #tpu.dot_dimension_numbers<[1], [0], [0], [1], [0, 0, 1, 1], [], []>} : vector<2x64xf32>, vector<64x4xf32>, vector<2x4xf32> -> vector<2x4xf32>
    %c0_32 = arith.constant 0 : index
    %c0_33 = arith.constant 0 : index
    %c0_34 = arith.constant 0 : index
    %42 = vector.load %arg8[%c0_32, %c0_33, %c0_34] : memref<1x2x4xf32, #tpu.memory_space<vmem>>, vector<1x2x4xf32>
    %43 = vector.shape_cast %42 : vector<1x2x4xf32> to vector<2x4xf32>
    %44 = vector.shape_cast %41 : vector<2x4xf32> to vector<1x2x4xf32>
    tpu.vector_store %arg8[%c0_32, %c0_33, %c0_34], %44 {strides = array<i32>} : memref<1x2x4xf32, #tpu.memory_space<vmem>>, vector<1x2x4xf32>,
    return
  }
  func.func @transform_0(%arg0: i32) -> (i32, i32, i32) {
    %c0_i32 = arith.constant 0 : i32
    %c0_i32_0 = arith.constant 0 : i32
    %c0_i32_1 = arith.constant 0 : i32
    return %arg0, %c0_i32, %c0_i32_0 : i32, i32, i32
  }
  func.func @transform_1(%arg0: i32) -> (i32, i32) {
    %c0_i32 = arith.constant 0 : i32
    %c0_i32_0 = arith.constant 0 : i32
    %c0_i32_1 = arith.constant 0 : i32
    return %c0_i32, %c0_i32_0 : i32, i32
  }
  func.func @transform_2(%arg0: i32) -> (i32, i32) {
    %c0_i32 = arith.constant 0 : i32
    %c0_i32_0 = arith.constant 0 : i32
    %c0_i32_1 = arith.constant 0 : i32
    return %c0_i32, %c0_i32_0 : i32, i32
  }
  func.func @transform_3(%arg0: i32) -> (i32, i32, i32) {
    %c0_i32 = arith.constant 0 : i32
    %c0_i32_0 = arith.constant 0 : i32
    %c0_i32_1 = arith.constant 0 : i32
    %c0_i32_2 = arith.constant 0 : i32
    return %c0_i32, %c0_i32_0, %c0_i32_1 : i32, i32, i32
  }
  func.func @transform_4(%arg0: i32) -> (i32, i32, i32) {
    %c0_i32 = arith.constant 0 : i32
    %c0_i32_0 = arith.constant 0 : i32
    %c0_i32_1 = arith.constant 0 : i32
    %c0_i32_2 = arith.constant 0 : i32
    return %c0_i32, %c0_i32_0, %c0_i32_1 : i32, i32, i32
  }
  func.func @transform_5(%arg0: i32) -> (i32, i32) {
    %c0_i32 = arith.constant 0 : i32
    %c0_i32_0 = arith.constant 0 : i32
    %c0_i32_1 = arith.constant 0 : i32
    return %c0_i32, %c0_i32_0 : i32, i32
  }
  func.func @transform_6(%arg0: i32) -> (i32, i32, i32) {
    %c0_i32 = arith.constant 0 : i32
    %c0_i32_0 = arith.constant 0 : i32
    %c0_i32_1 = arith.constant 0 : i32
    return %arg0, %c0_i32, %c0_i32_0 : i32, i32, i32
  }
  func.func @transform_7(%arg0: i32) -> (i32, i32, i32) {
    %c0_i32 = arith.constant 0 : i32
    %c0_i32_0 = arith.constant 0 : i32
    %c0_i32_1 = arith.constant 0 : i32
    return %arg0, %c0_i32, %c0_i32_0 : i32, i32, i32
  }
}

module attributes {stable_mosaic.version = 11 : i64} {
  func.func @_bn_relu_kernel(%arg0: i32, %arg1: memref<1x16x64xf32, #tpu.memory_space<vmem>>, %arg2: memref<1x64xf32, #tpu.memory_space<vmem>>, %arg3: memref<1x64xf32, #tpu.memory_space<vmem>>, %arg4: memref<1x16x64xf32, #tpu.memory_space<vmem>>) attributes {dimension_semantics = [#tpu.dimension_semantics<parallel>], iteration_bounds = array<i64: 2>, scalar_prefetch = 0 : i64, scratch_operands = 0 : i64, tpu.core_type = #tpu.core_type<tc>, window_params = [{transform_indices = @transform_0, window_bounds = array<i64: 1, 16, 64>}, {pipeline_mode = #tpu.pipeline_mode<synchronous>, transform_indices = @transform_1, window_bounds = array<i64: 1, 64>}, {pipeline_mode = #tpu.pipeline_mode<synchronous>, transform_indices = @transform_2, window_bounds = array<i64: 1, 64>}, {transform_indices = @transform_3, window_bounds = array<i64: 1, 16, 64>}]} {
    %c0 = arith.constant 0 : index
    %c0_0 = arith.constant 0 : index
    %c0_1 = arith.constant 0 : index
    %0 = vector.load %arg1[%c0, %c0_0, %c0_1] : memref<1x16x64xf32, #tpu.memory_space<vmem>>, vector<1x16x64xf32>
    %1 = vector.shape_cast %0 : vector<1x16x64xf32> to vector<16x64xf32>
    %c0_2 = arith.constant 0 : index
    %c0_3 = arith.constant 0 : index
    %2 = vector.load %arg2[%c0_2, %c0_3] : memref<1x64xf32, #tpu.memory_space<vmem>>, vector<1x64xf32>
    %3 = vector.broadcast %2 : vector<1x64xf32> to vector<16x64xf32>
    %4 = arith.mulf %1, %3 : vector<16x64xf32>
    %c0_4 = arith.constant 0 : index
    %c0_5 = arith.constant 0 : index
    %5 = vector.load %arg3[%c0_4, %c0_5] : memref<1x64xf32, #tpu.memory_space<vmem>>, vector<1x64xf32>
    %6 = vector.broadcast %5 : vector<1x64xf32> to vector<16x64xf32>
    %7 = arith.addf %4, %6 : vector<16x64xf32>
    %cst = arith.constant 0.000000e+00 : f32
    %8 = vector.broadcast %cst : f32 to vector<16x64xf32>
    %9 = arith.maximumf %7, %8 : vector<16x64xf32>
    %c0_6 = arith.constant 0 : index
    %c0_7 = arith.constant 0 : index
    %c0_8 = arith.constant 0 : index
    %10 = vector.load %arg4[%c0_6, %c0_7, %c0_8] : memref<1x16x64xf32, #tpu.memory_space<vmem>>, vector<1x16x64xf32>
    %11 = vector.shape_cast %10 : vector<1x16x64xf32> to vector<16x64xf32>
    %12 = vector.shape_cast %9 : vector<16x64xf32> to vector<1x16x64xf32>
    tpu.vector_store %arg4[%c0_6, %c0_7, %c0_8], %12 {strides = array<i32>} : memref<1x16x64xf32, #tpu.memory_space<vmem>>, vector<1x16x64xf32>,
    return
  }
  func.func @transform_0(%arg0: i32) -> (i32, i32, i32) {
    %c0_i32 = arith.constant 0 : i32
    %c0_i32_0 = arith.constant 0 : i32
    %c0_i32_1 = arith.constant 0 : i32
    return %arg0, %c0_i32, %c0_i32_0 : i32, i32, i32
  }
  func.func @transform_1(%arg0: i32) -> (i32, i32) {
    %c0_i32 = arith.constant 0 : i32
    %c0_i32_0 = arith.constant 0 : i32
    %c0_i32_1 = arith.constant 0 : i32
    return %c0_i32, %c0_i32_0 : i32, i32
  }
  func.func @transform_2(%arg0: i32) -> (i32, i32) {
    %c0_i32 = arith.constant 0 : i32
    %c0_i32_0 = arith.constant 0 : i32
    %c0_i32_1 = arith.constant 0 : i32
    return %c0_i32, %c0_i32_0 : i32, i32
  }
  func.func @transform_3(%arg0: i32) -> (i32, i32, i32) {
    %c0_i32 = arith.constant 0 : i32
    %c0_i32_0 = arith.constant 0 : i32
    %c0_i32_1 = arith.constant 0 : i32
    return %arg0, %c0_i32, %c0_i32_0 : i32, i32, i32
  }
}

</mosaic_0001>

<bundles_post_ra>
// kernel: tile.33
= control target key start
LH: loop header
LB: loop body
LE: loop exit
PB: predicated region body
PF: predicated region fallthrough
CT: control target
= control target key end

     0   :  { %s28_s0 = inlined_call_operand.vmem [shape: f32[4], index: 0, kind: input, shape index: {}]   ;;  %s29_s1 = inlined_call_operand.vmem [shape: f32[16,4], index: 1, kind: output, shape index: {}]  }
   0x1   :  { %v4_v0 = vld [vmem:[%s28_s0] ss:$0 sm:$0xff] }
   0x2   :  { %5 = vst [vmem:[%s29_s1] sm:$0xff] %v4_v0 }
   0x3   :  { %8 = vst [vmem:[%s29_s1 + $0x8] sm:$0xff] %v4_v0 }

// kernel: tile.34
= control target key start
LH: loop header
LB: loop body
LE: loop exit
PB: predicated region body
PF: predicated region fallthrough
CT: control target
= control target key end

     0   :  { %s131_s10 = smov 60   ;;  %s132_s11 = smov 52   ;;  %vm3_vm0 = vcmask 31744   ;;  %vm9_vm1 = vcmask 523744   ;;  %vm15_vm2 = vcmask 490944   ;;  %vm21_vm3 = vcmask 458144   ;;  %s207_s0 = inlined_call_operand.vmem [shape: f32[16,4], index: 0, kind: input, shape index: {}]   ;;  %s208_s1 = inlined_call_operand.vmem [shape: f32[1,64], index: 1, kind: output, shape index: {}]  }
   0x1   :  { %v101_v0 = vld [vmem:[%s207_s0 + $0xf] sm:$0x1]   ;;  %v103_v1 = vld [vmem:[%s207_s0 + $0xd] sm:$0x1]   ;;  %v105_v2 = vld [vmem:[%s207_s0 + $0xb] sm:$0x1]  }
   0x2   :  { %7 = vrot.lane.b32.xlu0 %v101_v0, %s131_s10  ;;  %19 = vrot.lane.b32.xlu1 %v103_v1, %s132_s11  ;;  %s133_s14 = smov 44   ;;  %v102_v3 = vld [vmem:[%s207_s0 + $0xe] sm:$0x1]   ;;  %v104_v4 = vld [vmem:[%s207_s0 + $0xc] sm:$0x1]   ;;  %s134_s19 = smov 56  }
   0x3   :  { %31 = vrot.lane.b32.xlu2 %v105_v2, %s133_s14  ;;  %s135_s20 = smov 48   ;;  %v106_v5 = vld [vmem:[%s207_s0 + $0xa] sm:$0x1]   ;;  %s136_s23 = smov 40   ;;  %v107_v6 = vld [vmem:[%s207_s0 + $0x9] sm:$0x1]  }
   0x4   :  { %v108_v7 = vld [vmem:[%s207_s0 + $0x8] sm:$0x1]   ;;  %s137_s28 = smov 36   ;;  %s138_s29 = smov 32   ;;  %v109_v8 = vld [vmem:[%s207_s0 + $0x7] sm:$0x1]  }
   0x5   :  { %s139_s3 = smov 28   ;;  %v110_v9 = vld [vmem:[%s207_s0 + $0x6] sm:$0x1]   ;;  %v111_v10 = vld [vmem:[%s207_s0 + $0x5] sm:$0x1]   ;;  %s140_s8 = smov 24  }
   0x6   :  { %s141_s9 = smov 20   ;;  %v112_v11 = vld [vmem:[%s207_s0 + $0x4] sm:$0x1]   ;;  %s142_s12 = smov 16   ;;  %v113_v12 = vld [vmem:[%s207_s0 + $0x3] sm:$0x1]  }
   0x7   :  { %v114_v13 = vld [vmem:[%s207_s0 + $0x2] sm:$0x1]   ;;  %s143_s17 = smov 12   ;;  %s144_s18 = smov 8   ;;  %v115_v14 = vld [vmem:[%s207_s0 + $0x1] sm:$0x1]  }
   0x8   :  { %s145_s21 = smov 4   ;;  %v2_v15 = vld [vmem:[%s207_s0] sm:$0x1]   ;;  %vm27_vm4 = vcmask 425344   ;;  %vm33_vm5 = vcmask 392544   ;;  %vm39_vm6 = vcmask 359744  }
   0x9   :  { %4 = vst.msk [vmem:[#allocation0] sm:$0x1] %vm3_vm0, %v2_v15   ;;  %vm45_vm7 = vcmask 326944   ;;  %vm51_vm8 = vcmask 294144   ;;  %vm57_vm9 = vcmask 261344   ;;  %vm63_vm10 = vcmask 228544  }
   0xa   :  { %13 = vrot.lane.b32.xlu0 %v102_v3, %s134_s19  ;;  %25 = vrot.lane.b32.xlu1 %v104_v4, %s135_s20  ;;  %vm69_vm11 = vcmask 195744   ;;  %vm75_vm12 = vcmask 162944   ;;  %vm81_vm13 = vcmask 130144   ;;  %vm87_vm14 = vcmask 97344  }
   0xb   :  { %37 = vrot.lane.b32.xlu2 %v106_v5, %s136_s23  ;;  %vm93_vm15 = vcmask 64544  }
  0x12   :  { %43 = vrot.lane.b32.xlu0 %v107_v6, %s137_s28  ;;  %49 = vrot.lane.b32.xlu1 %v108_v7, %s138_s29 }
  0x13   :  { %55 = vrot.lane.b32.xlu2 %v109_v8, %s139_s3 }
  0x1a   :  { %61 = vrot.lane.b32.xlu0 %v110_v9, %s140_s8  ;;  %67 = vrot.lane.b32.xlu1 %v111_v10, %s141_s9 }
  0x1b   :  { %73 = vrot.lane.b32.xlu2 %v112_v11, %s142_s12 }
  0x22   :  { %79 = vrot.lane.b32.xlu0 %v113_v12, %s143_s17  ;;  %85 = vrot.lane.b32.xlu1 %v114_v13, %s144_s18 }
  0x23   :  { %91 = vrot.lane.b32.xlu2 %v115_v14, %s145_s21 }
  0x5d   :  { %v32_v16 = vpop.permute.xlu2 %31  }
  0x65   :  { %v38_v17 = vpop.permute.xlu2 %37  }
  0x6d   :  { %v56_v18 = vpop.permute.xlu2 %55  }
  0x74   :  { %v8_v19 = vpop.permute.xlu0 %7   ;;  %v20_v20 = vpop.permute.xlu1 %19  }
  0x75   :  { %10 = vst.msk [vmem:[#allocation0] sm:$0x1] %vm9_vm1, %v8_v19   ;;  %v74_v21 = vpop.permute.xlu2 %73  }
  0x7c   :  { %v14_v22 = vpop.permute.xlu0 %13   ;;  %v26_v23 = vpop.permute.xlu1 %25  }
  0x7d   :  { %16 = vst.msk [vmem:[#allocation0] sm:$0x1] %vm15_vm2, %v14_v22   ;;  %v92_v24 = vpop.permute.xlu2 %91  }
  0x7e   :  { %22 = vst.msk [vmem:[#allocation0] sm:$0x1] %vm21_vm3, %v20_v20  }
  0x7f   :  { %28 = vst.msk [vmem:[#allocation0] sm:$0x1] %vm27_vm4, %v26_v23  }
  0x80   :  { %34 = vst.msk [vmem:[#allocation0] sm:$0x1] %vm33_vm5, %v32_v16  }
  0x81   :  { %40 = vst.msk [vmem:[#allocation0] sm:$0x1] %vm39_vm6, %v38_v17  }
  0x84   :  { %v44_v25 = vpop.permute.xlu0 %43   ;;  %v50_v26 = vpop.permute.xlu1 %49  }
  0x85   :  { %46 = vst.msk [vmem:[#allocation0] sm:$0x1] %vm45_vm7, %v44_v25  }
  0x86   :  { %52 = vst.msk [vmem:[#allocation0] sm:$0x1] %vm51_vm8, %v50_v26  }
  0x87   :  { %58 = vst.msk [vmem:[#allocation0] sm:$0x1] %vm57_vm9, %v56_v18  }
  0x8c   :  { %v62_v27 = vpop.permute.xlu0 %61   ;;  %v68_v28 = vpop.permute.xlu1 %67  }
  0x8d   :  { %64 = vst.msk [vmem:[#allocation0] sm:$0x1] %vm63_vm10, %v62_v27  }
  0x8e   :  { %70 = vst.msk [vmem:[#allocation0] sm:$0x1] %vm69_vm11, %v68_v28  }
  0x8f   :  { %76 = vst.msk [vmem:[#allocation0] sm:$0x1] %vm75_vm12, %v74_v21  }
  0x94   :  { %v80_v29 = vpop.permute.xlu0 %79   ;;  %v86_v30 = vpop.permute.xlu1 %85  }
  0x95   :  { %82 = vst.msk [vmem:[#allocation0] sm:$0x1] %vm81_vm13, %v80_v29  }
  0x96   :  { %88 = vst.msk [vmem:[#allocation0] sm:$0x1] %vm87_vm14, %v86_v30  }
  0x97   :  { %94 = vst.msk [vmem:[#allocation0] sm:$0x1] %vm93_vm15, %v92_v24  }
  0x9e   :  { %v97_v31 = vld [vmem:[#allocation0] sm:$0x1] }
  0x9f   :  { %100 = vst [vmem:[%s208_s1] sm:$0x1] %v97_v31 }

// kernel: unet_up2_forward.3
= control target key start
LH: loop header
LB: loop body
LE: loop exit
PB: predicated region body
PF: predicated region fallthrough
CT: control target
= control target key end

     0   :  { %s1572_s13 = smov 0   ;;  %s1791_s0 = inlined_call_operand.vmem [shape: f32[2,7,56], index: 0, kind: input, shape index: {}]   ;;  %s1792_s1 = inlined_call_operand.vmem [shape: bf16[2,16,64], index: 1, kind: input, shape index: {}]   ;;  %s1793_s2 = inlined_call_operand.vmem [shape: bf16[2,16,7], index: 2, kind: input, shape index: {}]   ;;  %s1794_s3 = inlined_call_operand.vmem [shape: bf16[4,56,64], index: 3, kind: input, shape index: {}]   ;;  %s1795_s4 = inlined_call_operand.vmem [shape: f32[1,64], index: 4, kind: input, shape index: {}]   ;;  %s1796_s5 = inlined_call_operand.vmem [shape: bf16[3,64,64], index: 5, kind: input, shape index: {}]   ;;  %s1797_s6 = inlined_call_operand.vmem [shape: bf16[3,64,64], index: 6, kind: input, shape index: {}]   ;;  %s1798_s7 = inlined_call_operand.vmem [shape: bf16[2,16,16], index: 7, kind: input, shape index: {}]   ;;  %s1799_s8 = inlined_call_operand.vmem [shape: f32[64,4], index: 8, kind: input, shape index: {}]   ;;  %s1800_s9 = inlined_call_operand.vmem [shape: bf16[2,16,64], index: 9, kind: output, shape index: {0}]   ;;  %s1801_s10 = inlined_call_operand.vmem [shape: f32[2,2,4], index: 10, kind: output, shape index: {1}]  }
   0x1 LB: > { %s1204_s14 = sadd.s32 4294967295, %s1514_s13   ;;  %p1208_p0 = scmp.ge.s32.totalorder %s1514_s13, 1  ;;  %s1514_s13 = sphi %s1572_s13, %s21_s13  }
   0x2   : > { %p324_p1 = scmp.lt.s32.totalorder %s1514_s13, 3 }
   0x4   : > { %p325_p2 = pnand %p1208_p0, %p324_p1 }
   0x5   : > { %p370_p3 = scmp.lt.s32.totalorder (!%p325_p2), %s1204_s14, 1 }
   0x6   : > { %328 = sbr.rel (%p325_p2) target bundleno = 763 (0x2fb), region = 56 }
   0xb   : > { %vm402_vm0 = vcmask 1042432   ;;  %v1226_v0 = vld [vmem:[%s1794_s3 + $0x34] sm:$0xf]  ;;  %v430_v1 = vld [vmem:[%s1794_s3 + $0x18] sm:$0xf]  ;;  %s1803_s14 = smov (!%p370_p3, %s1204_s14), 1 }
   0xc   : > { %v452_v2 = vunpack.c.l.b16 %v1226_v0  ;;  %v494_v3 = vunpack.c.l.b16 %v430_v1  ;;  %vm403_vm1 = vcmask 1043456   ;;  %v1516_v4 = vmov 65535   ;;  %s1589_s19 = sshll.u32 %s1803_s14, 3  ;;  %v1457_v14 = vld [vmem:[%s1793_s2] sm:$0xff]  ;;  %v1464_v15 = vld [vmem:[%s1793_s2 + $0x8] sm:$0xff]  ;;  %v1460_v21 = vld [vmem:[%s1794_s3 + $0x10] sm:$0xff] }
   0xd   : > { %v404_v5 = vsel %vm402_vm0, 4294967295, %v1516_v4  ;;  %s373_s22 = scalar_lea.vmem %s1791_s0, %s1589_s19  ;;  %vm398_vm2 = vcmask 56320   ;;  %v1286_v16 = vld [vmem:[%s1794_s3 + $0x6c] sm:$0xf]  ;;  %v1266_v17 = vld [vmem:[%s1794_s3 + $0x50] sm:$0xf]  ;;  %s378_s23 = scalar_lea.vmem %s1792_s1, %s1589_s19 }
   0xe   : > { %v456_v6 = vpack.c.b16 %v452_v2, %v452_v2  ;;  %v498_v7 = vpack.c.b16 %v494_v3, %v494_v3  ;;  %v389_v8 = vld [vmem:[%s373_s22] sm:$0x7f]  ;;  %v405_v9 = vsel %vm403_vm1, %v404_v5, 0  ;;  %v617_v18 = vunpack.c.l.b16 %v1286_v16  ;;  %v1463_v20 = vld [vmem:[%s1794_s3 + $0x2c] sm:$0xff]  ;;  %v1468_v34 = vld [vmem:[%s1794_s3 + $0x54] sm:$0xff]  ;;  %s383_s28 = scalar_lea.vmem %s1800_s9, %s1589_s19  ;;  %s1214_s19 = sshll.u32 %s1803_s14, 1 }
   0xf   : > { %v390_v12 = vpack.c.bf16 %v389_v8, %v389_v8  ;;  %v566_v19 = vunpack.c.l.b16 %v1266_v17  ;;  %v1462_v24 = vld [vmem:[%s1794_s3 + $0x24] sm:$0xff]  ;;  %v1461_v30 = vld [vmem:[%s1794_s3 + $0x1c] sm:$0xff]  ;;  %vm460_vm3 = vcmask 457728   ;;  %vm674_vm4 = vcmask 130048   ;;  %v1479_v48 = vld [vmem:[%s1796_s5 + $0x10] sm:$0xff]  ;;  %s387_s11 = scalar_lea.vmem %s1801_s10, %s1214_s19 }
  0x10   : > { %v465_v10 = vsel %vm403_vm1, %v456_v6, 0  ;;  %v503_v11 = vsel %vm403_vm1, %v498_v7, 0  ;;  %v621_v22 = vpack.c.b16 %v617_v18, %v617_v18  ;;  %v1459_v25 = vld [vmem:[%s1794_s3 + $0x8] sm:$0xff]  ;;  %v1458_v31 = vld [vmem:[%s1794_s3] sm:$0xff]  ;;  %v1465_v35 = vld [vmem:[%s1794_s3 + $0x38] sm:$0xff]  ;;  %vm725_vm5 = vcmask 523264  }
  0x11   : > { %471 = vmatpush.bf16.msra.mxu1 %v465_v10  ;;  %509 = vmatpush.bf16.msra.mxu2 %v503_v11  ;;  %v407_v13 = vand.u32 %v405_v9, %v390_v12  ;;  %v570_v23 = vpack.c.b16 %v566_v19, %v566_v19  ;;  %v1470_v28 = vld [vmem:[%s1794_s3 + $0x64] sm:$0xff]  ;;  %v1469_v32 = vld [vmem:[%s1794_s3 + $0x5c] sm:$0xff]  ;;  %v1488_v49 = vld [vmem:[%s1797_s6 + $0x30] sm:$0xff]  ;;  %vm1048_vm6 = vcmask 519168   ;;  %vm1071_vm7 = vcmask 1040384  }
  0x12   : > { %v626_v26 = vsel %vm403_vm1, %v621_v22, 0  ;;  %v1467_v29 = vld [vmem:[%s1794_s3 + $0x48] sm:$0xff]  ;;  %v1466_v33 = vld [vmem:[%s1794_s3 + $0x40] sm:$0xff]  ;;  %v1480_v45 = vld [vmem:[%s1796_s5 + $0x18] sm:$0xff]  ;;  %vm1104_vm8 = vcmask 25600  }
  0x13   : > { %416 = vmatpush.bf16.msra.mxu0 %v407_v13  ;;  %537 = vmatpush.bf16.msra.mxu3 %v407_v13  ;;  %v578_v27 = vsel %vm403_vm1, %v570_v23, 0  ;;  %v1471_v36 = vld [vmem:[%s378_s23] sm:$0xff]  ;;  %v1662_v44 = vld [vmem:[%s1798_s7 + $0x8] sm:$0xff]  ;;  %v1489_v46 = vld [vmem:[%s1797_s6 + $0x38] sm:$0xff] }
  0x14   : > { %v1655_v43 = vld [vmem:[%s1798_s7] sm:$0xff]  ;;  %v1485_v47 = vld [vmem:[%s1796_s5 + $0x58] sm:$0xff]  ;;  %v1484_v51 = vld [vmem:[%s1796_s5 + $0x50] sm:$0xff] }
  0x15   : > { %472 = vmatpush.bf16.msra.mxu1 %v1463_v20  ;;  %510 = vmatpush.bf16.msra.mxu2 %v1460_v21  ;;  %v1475_v50 = vld [vmem:[%s1796_s5 + $0x38] sm:$0xff]  ;;  %v1478_v52 = vld [vmem:[%s1796_s5 + $0x8] sm:$0xff]  ;;  %v1474_v54 = vld [vmem:[%s1796_s5 + $0x30] sm:$0xff] }
  0x16   : > { %1219 = vmatmul.msk.bf16.vlgmr.msra.gmra.mxu0 %vm398_vm2, %v1457_v14  ;;  %1259 = vmatmul.msk.bf16.vlgmr.msra.gmra.mxu3 %vm398_vm2, %v1464_v15  ;;  %v1487_v53 = vld [vmem:[%s1797_s6 + $0x28] sm:$0xff]  ;;  %v1477_v56 = vld [vmem:[%s1796_s5] sm:$0xff]  ;;  %v1493_v21 = vld [vmem:[%s1797_s6 + $0x18] sm:$0xff] }
  0x17   : > { %632 = vmatpush.bf16.msrb.mxu3 %v626_v26  ;;  %584 = vmatpush.bf16.msrb.mxu0 %v578_v27  ;;  %v1483_v55 = vld [vmem:[%s1796_s5 + $0x48] sm:$0xff]  ;;  %v1486_v57 = vld [vmem:[%s1797_s6 + $0x20] sm:$0xff]  ;;  %v1492_v22 = vld [vmem:[%s1797_s6 + $0x10] sm:$0xff] }
  0x18   : > { %v1473_v58 = vld [vmem:[%s1796_s5 + $0x28] sm:$0xff]  ;;  %v1482_v59 = vld [vmem:[%s1796_s5 + $0x40] sm:$0xff]  ;;  %v1497_v23 = vld [vmem:[%s1797_s6 + $0x58] sm:$0xff] }
  0x19   : > { %473 = vmatpush.bf16.msra.mxu1 %v1462_v24  ;;  %511 = vmatpush.bf16.msra.mxu2 %v1459_v25  ;;  %v1472_v60 = vld [vmem:[%s1796_s5 + $0x20] sm:$0xff]  ;;  %v1491_v24 = vld [vmem:[%s1797_s6 + $0x8] sm:$0xff]  ;;  %v1496_v25 = vld [vmem:[%s1797_s6 + $0x50] sm:$0xff] }
  0x1a   : > { %v1507_v9 = vld [vmem:[%s1795_s4] ss:$0 sm:$0xff]  ;;  %v1495_v27 = vld [vmem:[%s1797_s6 + $0x48] sm:$0xff] }
  0x1b   : > { %633 = vmatpush.bf16.msrb.mxu3 %v1470_v28  ;;  %585 = vmatpush.bf16.msrb.mxu0 %v1467_v29  ;;  %v1490_v26 = vld [vmem:[%s1797_s6] sm:$0xff] }
  0x1c   : > { %v1494_v28 = vld [vmem:[%s1797_s6 + $0x40] sm:$0xff] }
  0x1d   : > { %474 = vmatpush.bf16.msra.mxu1 %v1461_v30  ;;  %512 = vmatpush.bf16.msra.mxu2 %v1458_v31 }
  0x1f   : > { %634 = vmatpush.bf16.msrb.mxu3 %v1469_v32  ;;  %586 = vmatpush.bf16.msrb.mxu0 %v1466_v33 }
  0x21   : > { %685 = vmatpush.bf16.msrb.mxu1 %v1471_v36  ;;  %733 = vmatpush.bf16.msrb.mxu2 %v1480_v45  ;;  %v1080_v45 = vld [vmem:[%s1799_s8 + $0x38] sm:$0xff] }
  0x23   : > { %635 = vmatpush.bf16.msrb.mxu3 %v1468_v34  ;;  %587 = vmatpush.bf16.msrb.mxu0 %v1465_v35 }
  0x25   : > { %734 = vmatpush.bf16.msrb.mxu2 %v1479_v48  ;;  %v1077_v48 = vld [vmem:[%s1799_s8 + $0x20] sm:$0xff] }
  0x27   : > { %802 = vmatpush.bf16.msra.mxu3 %v1471_v36  ;;  %774 = vmatpush.bf16.msra.mxu0 %v1475_v50  ;;  %v1075_v50 = vld [vmem:[%s1799_s8 + $0x10] sm:$0xff] }
  0x29   : > { %735 = vmatpush.bf16.msrb.mxu2 %v1478_v52  ;;  %v1074_v52 = vld [vmem:[%s1799_s8 + $0x8] sm:$0xff] }
  0x2b   : > { %775 = vmatpush.bf16.msra.mxu0 %v1474_v54  ;;  %v1073_v54 = vld [vmem:[%s1799_s8] sm:$0xff] }
  0x2d   : > { %736 = vmatpush.bf16.msrb.mxu2 %v1477_v56 }
  0x2f   : > { %776 = vmatpush.bf16.msra.mxu0 %v1473_v58 }
  0x33   : > { %777 = vmatpush.bf16.msra.mxu0 %v1472_v60 }
  0x93   : > { %v418_v37 = vpop.f32.mrf.mxu0 }
  0x99   : > { %v539_v38 = vpop.f32.mrf.mxu3 }
  0x9b   : > { %v420_v39 = vpop.f32.mrf.mxu0 }
  0x9c   : > { %v423_v40 = vpack.c.bf16 %v420_v39, %v418_v37 }
  0x9e   : > { %1239 = vmatmul.msk.bf16.vlgmr.msra.gmra.mxu1 %vm460_vm3, %v423_v40  ;;  %1252 = vmatmul.msk.bf16.vlgmr.msra.gmra.mxu2 %vm460_vm3, %v423_v40 }
  0x9f   : > { %850 = vmatpush.bf16.msra.mxu1 %v1485_v47  ;;  %v1078_v47 = vld [vmem:[%s1799_s8 + $0x28] sm:$0xff] }
  0xa1   : > { %v541_v41 = vpop.f32.mrf.mxu3 }
  0xa2   : > { %v544_v42 = vpack.c.bf16 %v541_v41, %v539_v38 }
  0xa3   : > { %851 = vmatpush.bf16.msra.mxu1 %v1484_v51 }
  0xa4   : > { %1279 = vmatmul.msk.bf16.vlgmr.msrb.gmra.mxu0 %vm460_vm3, %v544_v42  ;;  %1299 = vmatmul.msk.bf16.vlgmr.msrb.gmra.mxu3 %vm460_vm3, %v544_v42 }
  0xa5   : > { %967 = vmatpush.bf16.msrb.mxu3 %v1489_v46  ;;  %926 = vmatpush.bf16.msrb.mxu0 %v1493_v21  ;;  %v1079_v46 = vld [vmem:[%s1799_s8 + $0x30] sm:$0xff] }
  0xa7   : > { %852 = vmatpush.bf16.msra.mxu1 %v1483_v55 }
  0xa9   : > { %968 = vmatpush.bf16.msrb.mxu3 %v1488_v49  ;;  %927 = vmatpush.bf16.msrb.mxu0 %v1492_v22  ;;  %v1076_v49 = vld [vmem:[%s1799_s8 + $0x18] sm:$0xff] }
  0xab   : > { %853 = vmatpush.bf16.msra.mxu1 %v1482_v59 }
  0xad   : > { %969 = vmatpush.bf16.msrb.mxu3 %v1487_v53  ;;  %928 = vmatpush.bf16.msrb.mxu0 %v1491_v24 }
  0xae   : > { %1316 = vmatmul.msk.bf16.vlgmr.msrb.gmra.mxu1 %vm674_vm4, %v1655_v43 }
  0xb1   : > { %970 = vmatpush.bf16.msrb.mxu3 %v1486_v57  ;;  %929 = vmatpush.bf16.msrb.mxu0 %v1490_v26 }
  0xb4   : > { %1357 = vmatmul.msk.bf16.vlgmr.msra.gmra.mxu3 %vm674_vm4, %v1662_v44  ;;  %1350 = vmatmul.msk.bf16.vlgmr.msra.gmra.mxu0 %vm725_vm5, %v1471_v36 }
  0xb5   : > { %1092 = vmatpush.msra.mxu0 %v1080_v45 }
  0xb7   : > { %1093 = vmatpush.msra.mxu0 %v1079_v46 }
  0xb9   : > { %1094 = vmatpush.msra.mxu0 %v1078_v47 }
  0xbb   : > { %1095 = vmatpush.msra.mxu0 %v1077_v48 }
  0xbd   : > { %1096 = vmatpush.msra.mxu0 %v1076_v49 }
  0xbf   : > { %1097 = vmatpush.msra.mxu0 %v1075_v50 }
  0xc1   : > { %1098 = vmatpush.msra.mxu0 %v1074_v52 }
  0xc3   : > { %1099 = vmatpush.msra.mxu0 %v1073_v54 }
 0x11b   : > { %v476_v61 = vpop.f32.mrf.mxu1 }
 0x121   : > { %v514_v62 = vpop.f32.mrf.mxu2  ;;  %v589_v63 = vpop.f32.mrf.mxu0 }
 0x122   : > { %v515_v2 = vadd.f32 %v514_v62, %v476_v61 }
 0x123   : > { %v478_v0 = vpop.f32.mrf.mxu1 }
 0x124   : > { %v594_v6 = vadd.f32 %v589_v63, %v515_v2 }
 0x127   : > { %v637_v1 = vpop.f32.mrf.mxu3 }
 0x128   : > { %v642_v8 = vadd.f32 %v637_v1, %v594_v6 }
 0x129   : > { %v516_v3 = vpop.f32.mrf.mxu2  ;;  %v591_v7 = vpop.f32.mrf.mxu0 }
 0x12a   : > { %v517_v4 = vadd.f32 %v516_v3, %v478_v0  ;;  %v648_v13 = vadd.f32 %v1507_v9, %v642_v8 }
 0x12b   : > { %v687_v5 = vpop.f32.mrf.mxu1 }
 0x12c   : > { %v595_v10 = vadd.f32 %v591_v7, %v517_v4 }
 0x12f   : > { %v639_v11 = vpop.f32.mrf.mxu3 }
 0x130   : > { %v643_v12 = vadd.f32 %v639_v11, %v595_v10 }
 0x131   : > { %v779_v30 = vpop.f32.mrf.mxu0 }
 0x132   : > { %v649_v14 = vadd.f32 %v1507_v9, %v643_v12 }
 0x133   : > { %v689_v15 = vpop.f32.mrf.mxu1 }
 0x134   : > { %v862_v16 = vpack.c.bf16 %v649_v14, %v648_v13  ;;  %v692_v17 = vpack.c.bf16 %v689_v15, %v687_v5 }
 0x136   : > { %1333 = vmatmul.msk.bf16.vlgmr.msrb.gmra.mxu2 %vm725_vm5, %v692_v17  ;;  %1425 = vmatmul.msk.bf16.vlgmr.msrb.gmra.mxu3 %vm725_vm5, %v862_v16 }
 0x137   : > { %879 = vmatpush.bf16.msra.mxu2 %v862_v16  ;;  %984 = vmatpush.bf16.msrb.mxu1 %v862_v16  ;;  %v804_v18 = vpop.f32.mrf.mxu3 }
 0x139   : > { %v781_v35 = vpop.f32.mrf.mxu0 }
 0x13b   : > { %1032 = vmatpush.bf16.msrb.mxu2 %v1497_v23 }
 0x13f   : > { %v806_v19 = vpop.f32.mrf.mxu3  ;;  %1033 = vmatpush.bf16.msrb.mxu2 %v1496_v25 }
 0x140   : > { %v809_v20 = vpack.c.bf16 %v806_v19, %v804_v18 }
 0x142   : > { %1382 = vmatmul.msk.bf16.vlgmr.msra.gmra.mxu1 %vm725_vm5, %v809_v20 }
 0x143   : > { %1034 = vmatpush.bf16.msrb.mxu2 %v1495_v27 }
 0x146   : > { %1391 = vmatmul.msk.bf16.vlgmr.msra.gmra.mxu2 %vm674_vm4, %v1655_v43 }
 0x147   : > { %1035 = vmatpush.bf16.msrb.mxu2 %v1494_v28 }
 0x152   : > { %1426 = vmatmul.msk.bf16.vlgmr.msrb.gmra.mxu1 %vm674_vm4, %v1662_v44 }
 0x1b9   : > { %v738_v29 = vpop.f32.mrf.mxu2  ;;  %v972_v53 = vpop.f32.mrf.mxu3 }
 0x1ba   : > { %v780_v31 = vadd.f32 %v779_v30, %v738_v29 }
 0x1bf   : > { %v855_v32 = vpop.f32.mrf.mxu1 }
 0x1c0   : > { %v860_v33 = vadd.f32 %v855_v32, %v780_v31 }
 0x1c1   : > { %v740_v34 = vpop.f32.mrf.mxu2  ;;  %v974_v61 = vpop.f32.mrf.mxu3 }
 0x1c2   : > { %v782_v36 = vadd.f32 %v781_v35, %v740_v34 }
 0x1c7   : > { %v857_v37 = vpop.f32.mrf.mxu1 }
 0x1c8   : > { %v861_v38 = vadd.f32 %v857_v37, %v782_v36 }
 0x1c9   : > { %v881_v39 = vpop.f32.mrf.mxu2 }
 0x1cf   : > { %v986_v40 = vpop.f32.mrf.mxu1 }
 0x1d1   : > { %v883_v41 = vpop.f32.mrf.mxu2 }
 0x1d2   : > { %v886_v42 = vpack.c.bf16 %v883_v41, %v881_v39 }
 0x1d4   : > { %1408 = vmatmul.msk.bf16.vlgmr.msrb.gmra.mxu0 %vm725_vm5, %v886_v42 }
 0x1d7   : > { %v988_v43 = vpop.f32.mrf.mxu1 }
 0x1d8   : > { %v991_v44 = vpack.c.bf16 %v988_v43, %v986_v40 }
 0x1da   : > { %1451 = vmatmul.msk.bf16.vlgmr.msrb.gmra.mxu2 %vm725_vm5, %v991_v44 }
 0x251   : > { %v931_v51 = vpop.f32.mrf.mxu0 }
 0x252   : > { %v973_v55 = vadd.f32 %v972_v53, %v931_v51 }
 0x259   : > { %v933_v59 = vpop.f32.mrf.mxu0 }
 0x25a   : > { %v975_v62 = vadd.f32 %v974_v61, %v933_v59 }
 0x25d   : > { %v1037_v56 = vpop.f32.mrf.mxu2 }
 0x25e   : > { %v1042_v57 = vadd.f32 %v1037_v56, %v973_v55 }
 0x260   : > { %v1044_v58 = vadd.f32 %v1042_v57, %v860_v33 }
 0x262   : > { %v1046_v60 = vpack.c.bf16 %v1044_v58, %v1044_v58  ;;  %v1060_v1 = vmul.f32 %v1044_v58, %v1044_v58  ;;  %v1051_v3 = vsel %vm725_vm5, %v1044_v58, 0.0 }
 0x264   : > { %1049 = vst.msk [vmem:[%s383_s28] sm:$0xf] %vm1048_vm6, %v1046_v60  ;;  %v1062_v8 = vsel %vm725_vm5, %v1060_v1, 0.0 }
 0x265   : > { %v1039_v63 = vpop.f32.mrf.mxu2 }
 0x266   : > { %v1043_v0 = vadd.f32 %v1039_v63, %v975_v62 }
 0x268   : > { %v1045_v2 = vadd.f32 %v1043_v0, %v861_v38 }
 0x26a   : > { %v1047_v4 = vpack.c.bf16 %v1045_v2, %v1045_v2  ;;  %v1052_v5 = vsel %vm725_vm5, %v1045_v2, 0.0  ;;  %v1061_v6 = vmul.f32 %v1045_v2, %v1045_v2 }
 0x26b   : > { %v1053_v7 = vadd.f32 %v1052_v5, %v1051_v3 }
 0x26c   : > { %1050 = vst.msk [vmem:[%s383_s28 + $0x4] sm:$0xf] %vm1048_vm6, %v1047_v4  ;;  %v1063_v9 = vsel %vm725_vm5, %v1061_v6, 0.0 }
 0x26d   : > { %v1054_v10 = vrot.slane %v1053_v7, 4  ;;  %v1064_v11 = vadd.f32 %v1063_v9, %v1062_v8 }
 0x26f   : > { %v1055_v12 = vadd.f32 %v1054_v10, %v1053_v7  ;;  %v1065_v13 = vrot.slane %v1064_v11, 4 }
 0x271   : > { %v1056_v14 = vrot.slane %v1055_v12, 2  ;;  %v1066_v15 = vadd.f32 %v1065_v13, %v1064_v11 }
 0x273   : > { %v1057_v16 = vadd.f32 %v1056_v14, %v1055_v12  ;;  %v1067_v17 = vrot.slane %v1066_v15, 2 }
 0x275   : > { %v1058_v18 = vrot.slane %v1057_v16, 1  ;;  %v1068_v19 = vadd.f32 %v1067_v17, %v1066_v15 }
 0x277   : > { %v1069_v20 = vrot.slane %v1068_v19, 1  ;;  %v1059_v21 = vadd.f32 %v1058_v18, %v1057_v16 }
 0x279   : > { %v1070_v22 = vadd.f32 %v1069_v20, %v1068_v19 }
 0x27b   : > { %v1072_v23 = vsel %vm1071_vm7, %v1059_v21, %v1070_v22 }
 0x27c   : > { %1452 = vmatmul.msk.f32.vlgmr.msra.gmra.mxu0 %vm725_vm5, %v1072_v23 }
 0x2f9   : > { %v1101_v24 = vpop.f32.mrf.mxu0 }
 0x2fa   : > { %1105 = vst.msk [vmem:[%s387_s11] sm:$0x3] %vm1104_vm8, %v1101_v24 }
 0x2fb PF: > { %s21_s13 = sadd.s32 1, %s1514_s13  }
 0x2fc   : > { %p18_p4 = scmp.ge.s32.totalorder %s21_s13, 4  }
 0x2fe   :  { %20 = sbr.rel (!%p18_p4) target bundleno = 1 (0x1), region = 110 }

// kernel: unet_up2_forward.5
= control target key start
LH: loop header
LB: loop body
LE: loop exit
PB: predicated region body
PF: predicated region fallthrough
CT: control target
= control target key end

     0   :  { %s296_s12 = smov 0   ;;  %s313_s0 = inlined_call_operand.vmem [shape: f32[2,16,64], index: 0, kind: input, shape index: {}]   ;;  %s314_s1 = inlined_call_operand.vmem [shape: f32[1,64], index: 1, kind: input, shape index: {}]   ;;  %s315_s2 = inlined_call_operand.vmem [shape: f32[1,64], index: 2, kind: input, shape index: {}]   ;;  %s316_s3 = inlined_call_operand.vmem [shape: f32[2,16,64], index: 3, kind: output, shape index: {}]  }
   0x1 LB: > { %s245_s13 = sadd.s32 4294967295, %s274_s12   ;;  %p249_p0 = scmp.ge.s32.totalorder %s274_s12, 1  ;;  %s274_s12 = sphi %s296_s12, %s13_s12  }
   0x2   : > { %p137_p1 = scmp.lt.s32.totalorder %s274_s12, 3 }
   0x4   : > { %p138_p2 = pnand %p249_p0, %p137_p1 }
   0x5   : > { %p161_p3 = scmp.lt.s32.totalorder (!%p138_p2), %s245_s13, 1 }
   0x6   : > { %141 = sbr.rel (%p138_p2) target bundleno = 23 (0x17), region = 32 }
   0xb   : > { %s318_s13 = smov (!%p161_p3, %s245_s13), 1  ;;  %v266_v0 = vld [vmem:[%s314_s1] ss:$0 sm:$0xff]  ;;  %vm187_vm0 = vcmask 523264  }
   0xc   : > { %s256_s16 = sshll.u32 %s318_s13, 4  ;;  %v267_v1 = vld [vmem:[%s315_s2] ss:$0 sm:$0xff] }
   0xd   : > { %s165_s19 = scalar_lea.vmem %s313_s0, %s256_s16  ;;  %s170_s24 = scalar_lea.vmem %s316_s3, %s256_s16 }
   0xe   : > { %v171_v2 = vld [vmem:[%s165_s19] sm:$0xff]  ;;  %v172_v3 = vld [vmem:[%s165_s19 + $0x8] sm:$0xff] }
   0xf   : > { %v177_v4 = vmul.f32 %v266_v0, %v171_v2  ;;  %v178_v5 = vmul.f32 %v266_v0, %v172_v3 }
  0x11   : > { %v183_v6 = vadd.f32 %v267_v1, %v177_v4  ;;  %v184_v7 = vadd.f32 %v267_v1, %v178_v5 }
  0x13   : > { %v185_v8 = vmax.f32 %v183_v6, 0.0  ;;  %v186_v9 = vmax.f32 %v184_v7, 0.0 }
  0x15   : > { %188 = vst.msk [vmem:[%s170_s24] sm:$0xff] %vm187_vm0, %v185_v8 }
  0x16   : > { %189 = vst.msk [vmem:[%s170_s24 + $0x8] sm:$0xff] %vm187_vm0, %v186_v9 }
  0x17 PF: > { %s13_s12 = sadd.s32 1, %s274_s12  }
  0x18   : > { %p10_p4 = scmp.ge.s32.totalorder %s13_s12, 4  }
  0x1a   :  { %12 = sbr.rel (!%p10_p4) target bundleno = 1 (0x1), region = 62 }

// kernel: unet_up2_forward.4
= control target key start
LH: loop header
LB: loop body
LE: loop exit
PB: predicated region body
PF: predicated region fallthrough
CT: control target
= control target key end

     0   :  { %s827_s24 = smov 0   ;;  %s934_s0 = inlined_call_operand.vmem [shape: bf16[2,16,64], index: 0, kind: input, shape index: {}]   ;;  %s935_s1 = inlined_call_operand.vmem [shape: f32[1,64], index: 1, kind: input, shape index: {}]   ;;  %s936_s2 = inlined_call_operand.vmem [shape: f32[1,64], index: 2, kind: input, shape index: {}]   ;;  %s937_s3 = inlined_call_operand.vmem [shape: bf16[3,64,64], index: 3, kind: input, shape index: {}]   ;;  %s938_s4 = inlined_call_operand.vmem [shape: bf16[2,16,16], index: 4, kind: input, shape index: {}]   ;;  %s939_s5 = inlined_call_operand.vmem [shape: f32[64,4], index: 5, kind: input, shape index: {}]   ;;  %s940_s6 = inlined_call_operand.vmem [shape: f32[2,16,64], index: 6, kind: output, shape index: {0}]   ;;  %s941_s7 = inlined_call_operand.vmem [shape: f32[2,2,4], index: 7, kind: output, shape index: {1}]  }
   0x1 LB: > { %s657_s25 = sadd.s32 4294967295, %s785_s24   ;;  %p661_p0 = scmp.ge.s32.totalorder %s785_s24, 1  ;;  %s785_s24 = sphi %s827_s24, %s18_s24  }
   0x2   : > { %p240_p1 = scmp.lt.s32.totalorder %s785_s24, 3 }
   0x4   : > { %p241_p2 = pnand %p661_p0, %p240_p1 }
   0x5   : > { %p276_p3 = scmp.lt.s32.totalorder (!%p241_p2), %s657_s25, 1 }
   0x6   : > { %244 = sbr.rel (%p241_p2) target bundleno = 457 (0x1c9), region = 44 }
   0xb   : > { %s943_s25 = smov (!%p276_p3, %s657_s25), 1  ;;  %v754_v0 = vld [vmem:[%s937_s3 + $0x38] sm:$0xff]  ;;  %v753_v2 = vld [vmem:[%s937_s3 + $0x30] sm:$0xff]  ;;  %v777_v3 = vld [vmem:[%s935_s1] ss:$0 sm:$0xff]  ;;  %vm326_vm0 = vcmask 130048  }
   0xc   : > { %v759_v1 = vld [vmem:[%s937_s3 + $0x18] sm:$0xff]  ;;  %s749_s30 = sshll.u32 %s943_s25, 3  ;;  %426 = vmatpush.bf16.msra.mxu2 %v754_v0  ;;  %v778_v7 = vld [vmem:[%s936_s2] ss:$0 sm:$0xff]  ;;  %v752_v8 = vld [vmem:[%s937_s3 + $0x28] sm:$0xff]  ;;  %vm377_vm1 = vcmask 523264  }
   0xd   : > { %s280_s12 = scalar_lea.vmem %s934_s0, %s749_s30  ;;  %385 = vmatpush.bf16.msra.mxu1 %v759_v1  ;;  %v751_v13 = vld [vmem:[%s937_s3 + $0x20] sm:$0xff]  ;;  %v760_v18 = vld [vmem:[%s938_s4 + $0x8] sm:$0xff]  ;;  %v758_v19 = vld [vmem:[%s937_s3 + $0x10] sm:$0xff]  ;;  %s750_s13 = sshll.u32 %s943_s25, 4  ;;  %vm536_vm2 = vcmask 1040384   ;;  %vm569_vm3 = vcmask 25600  }
   0xe   : > { %v766_v4 = vld [vmem:[%s280_s12] sm:$0xff]   ;;  %v764_v20 = vld [vmem:[%s937_s3 + $0x58] sm:$0xff]  ;;  %v757_v21 = vld [vmem:[%s937_s3 + $0x8] sm:$0xff]  ;;  %s285_s16 = scalar_lea.vmem %s940_s6, %s750_s13  ;;  %s666_s17 = sshll.u32 %s943_s25, 1 }
   0xf   : > { %v767_v5 = vunpack.c.l.bf16 %v766_v4  ;;  %v768_v6 = vunpack.c.h.bf16 %v766_v4  ;;  %v755_v17 = vld [vmem:[%s938_s4] sm:$0xff]  ;;  %v763_v22 = vld [vmem:[%s937_s3 + $0x50] sm:$0xff]  ;;  %v762_v24 = vld [vmem:[%s937_s3 + $0x48] sm:$0xff]  ;;  %s289_s20 = scalar_lea.vmem %s941_s7, %s666_s17 }
  0x10   : > { %427 = vmatpush.bf16.msra.mxu2 %v753_v2  ;;  %v756_v23 = vld [vmem:[%s937_s3] sm:$0xff]  ;;  %v545_v32 = vld [vmem:[%s939_s5 + $0x38] sm:$0xff]  ;;  %v544_v33 = vld [vmem:[%s939_s5 + $0x30] sm:$0xff] }
  0x11   : > { %v299_v9 = vmul.f32 %v777_v3, %v767_v5  ;;  %v300_v10 = vmul.f32 %v777_v3, %v768_v6  ;;  %386 = vmatpush.bf16.msra.mxu1 %v758_v19  ;;  %v761_v25 = vld [vmem:[%s937_s3 + $0x40] sm:$0xff]  ;;  %v543_v34 = vld [vmem:[%s939_s5 + $0x28] sm:$0xff]  ;;  %v541_v36 = vld [vmem:[%s939_s5 + $0x18] sm:$0xff] }
  0x12   : > { %v542_v35 = vld [vmem:[%s939_s5 + $0x20] sm:$0xff]  ;;  %v540_v37 = vld [vmem:[%s939_s5 + $0x10] sm:$0xff]  ;;  %v539_v38 = vld [vmem:[%s939_s5 + $0x8] sm:$0xff] }
  0x13   : > { %v305_v11 = vadd.f32 %v778_v7, %v299_v9  ;;  %v306_v12 = vadd.f32 %v778_v7, %v300_v10  ;;  %v538_v39 = vld [vmem:[%s939_s5] sm:$0xff] }
  0x14   : > { %428 = vmatpush.bf16.msra.mxu2 %v752_v8 }
  0x15   : > { %v307_v14 = vmax.f32 %v305_v11, 0.0  ;;  %v308_v15 = vmax.f32 %v306_v12, 0.0  ;;  %387 = vmatpush.bf16.msra.mxu1 %v757_v21 }
  0x17   : > { %v309_v16 = vpack.c.bf16 %v308_v15, %v307_v14 }
  0x18   : > { %429 = vmatpush.bf16.msra.mxu2 %v751_v13 }
  0x19   : > { %337 = vmatpush.bf16.msra.mxu0 %v309_v16  ;;  %454 = vmatpush.bf16.msra.mxu3 %v309_v16 }
  0x1a   : > { %388 = vmatpush.bf16.msra.mxu1 %v756_v23 }
  0x1b   : > { %713 = vmatmul.msk.bf16.vlgmr.msra.gmra.mxu2 %vm377_vm1, %v309_v16 }
  0x1c   : > { %679 = vmatmul.msk.bf16.vlgmr.msra.gmra.mxu0 %vm326_vm0, %v755_v17  ;;  %720 = vmatmul.msk.bf16.vlgmr.msra.gmra.mxu3 %vm326_vm0, %v760_v18 }
  0x1d   : > { %502 = vmatpush.bf16.msrb.mxu0 %v764_v20  ;;  %557 = vmatpush.msrb.mxu3 %v545_v32 }
  0x1f   : > { %558 = vmatpush.msrb.mxu3 %v544_v33 }
  0x21   : > { %503 = vmatpush.bf16.msrb.mxu0 %v763_v22  ;;  %559 = vmatpush.msrb.mxu3 %v543_v34 }
  0x23   : > { %560 = vmatpush.msrb.mxu3 %v542_v35 }
  0x25   : > { %504 = vmatpush.bf16.msrb.mxu0 %v762_v24  ;;  %561 = vmatpush.msrb.mxu3 %v541_v36 }
  0x27   : > { %562 = vmatpush.msrb.mxu3 %v540_v37 }
  0x29   : > { %505 = vmatpush.bf16.msrb.mxu0 %v761_v25  ;;  %563 = vmatpush.msrb.mxu3 %v539_v38 }
  0x2b   : > { %564 = vmatpush.msrb.mxu3 %v538_v39 }
  0x99   : > { %v339_v26 = vpop.f32.mrf.mxu0 }
  0x9e   : > { %v431_v41 = vpop.f32.mrf.mxu2 }
  0x9f   : > { %v456_v27 = vpop.f32.mrf.mxu3 }
  0xa1   : > { %v341_v28 = vpop.f32.mrf.mxu0 }
  0xa2   : > { %v344_v29 = vpack.c.bf16 %v341_v28, %v339_v26 }
  0xa4   : > { %696 = vmatmul.msk.bf16.vlgmr.msra.gmra.mxu1 %vm377_vm1, %v344_v29 }
  0xa6   : > { %v433_v46 = vpop.f32.mrf.mxu2 }
  0xa7   : > { %v458_v30 = vpop.f32.mrf.mxu3 }
  0xa8   : > { %v461_v31 = vpack.c.bf16 %v458_v30, %v456_v27 }
  0xaa   : > { %745 = vmatmul.msk.bf16.vlgmr.msrb.gmra.mxu0 %vm377_vm1, %v461_v31 }
 0x121   : > { %v390_v40 = vpop.f32.mrf.mxu1 }
 0x122   : > { %v432_v42 = vadd.f32 %v431_v41, %v390_v40 }
 0x127   : > { %v507_v43 = vpop.f32.mrf.mxu0 }
 0x128   : > { %v512_v44 = vadd.f32 %v507_v43, %v432_v42 }
 0x129   : > { %v392_v45 = vpop.f32.mrf.mxu1 }
 0x12a   : > { %514 = vst.msk [vmem:[%s285_s16] sm:$0xff] %vm377_vm1, %v512_v44  ;;  %v434_v47 = vadd.f32 %v433_v46, %v392_v45  ;;  %v525_v49 = vmul.f32 %v512_v44, %v512_v44  ;;  %v516_v51 = vsel %vm377_vm1, %v512_v44, 0.0 }
 0x12c   : > { %v527_v55 = vsel %vm377_vm1, %v525_v49, 0.0 }
 0x12f   : > { %v509_v48 = vpop.f32.mrf.mxu0 }
 0x130   : > { %v513_v50 = vadd.f32 %v509_v48, %v434_v47 }
 0x132   : > { %515 = vst.msk [vmem:[%s285_s16 + $0x8] sm:$0xff] %vm377_vm1, %v513_v50  ;;  %v517_v52 = vsel %vm377_vm1, %v513_v50, 0.0  ;;  %v526_v53 = vmul.f32 %v513_v50, %v513_v50 }
 0x133   : > { %v518_v54 = vadd.f32 %v517_v52, %v516_v51 }
 0x134   : > { %v528_v56 = vsel %vm377_vm1, %v526_v53, 0.0 }
 0x135   : > { %v519_v57 = vrot.slane %v518_v54, 4  ;;  %v529_v58 = vadd.f32 %v528_v56, %v527_v55 }
 0x137   : > { %v520_v59 = vadd.f32 %v519_v57, %v518_v54  ;;  %v530_v60 = vrot.slane %v529_v58, 4 }
 0x139   : > { %v521_v61 = vrot.slane %v520_v59, 2  ;;  %v531_v62 = vadd.f32 %v530_v60, %v529_v58 }
 0x13b   : > { %v522_v63 = vadd.f32 %v521_v61, %v520_v59  ;;  %v532_v0 = vrot.slane %v531_v62, 2 }
 0x13d   : > { %v523_v1 = vrot.slane %v522_v63, 1  ;;  %v533_v2 = vadd.f32 %v532_v0, %v531_v62 }
 0x13f   : > { %v534_v3 = vrot.slane %v533_v2, 1  ;;  %v524_v4 = vadd.f32 %v523_v1, %v522_v63 }
 0x141   : > { %v535_v5 = vadd.f32 %v534_v3, %v533_v2 }
 0x143   : > { %v537_v6 = vsel %vm536_vm2, %v524_v4, %v535_v5 }
 0x144   : > { %746 = vmatmul.msk.f32.vlgmr.msrb.gmra.mxu3 %vm377_vm1, %v537_v6 }
 0x1c7   : > { %v566_v7 = vpop.f32.mrf.mxu3 }
 0x1c8   : > { %570 = vst.msk [vmem:[%s289_s20] sm:$0x3] %vm569_vm3, %v566_v7 }
 0x1c9 PF: > { %s18_s24 = sadd.s32 1, %s785_s24  }
 0x1ca   : > { %p15_p4 = scmp.ge.s32.totalorder %s18_s24, 4  }
 0x1cc   :  { %17 = sbr.rel (!%p15_p4) target bundleno = 1 (0x1), region = 89 }

</bundles_post_ra>
